<compile_context>
chip_gen: v7x
topology: tpu7x:2x2x1
jax: 0.10.0
libtpu: 0.0.40
codegen_flags: <defaults>
</compile_context>

<pallas_src>
import math

import jax
import jax.numpy as jnp
from jax import lax
from jax.experimental import pallas as pl
from jax.experimental.pallas import tpu as pltpu


def cal_linear_num(layer_num, num_timesteps_input):
    return num_timesteps_input + 4 * (2 ** layer_num - 1)


def _rup(x, m):
    return (x + m - 1) // m * m


# ---------------------------------------------------------------------------
# Blocking: rows (b, n segments) per grid step.
# ---------------------------------------------------------------------------
def _choose_blocking(M, S, O, lane_cap=1024):
    """Returns (MB, M_pad, G).

    G : segments folded into one block-diagonal Linear chunk; G*O % 128 == 0 so
        every output slab is lane-dense (unmasked vst).
    MB: segments per grid step.  MB is a multiple of G and MB*S is a multiple of
        128, so every block is (8,128)-aligned regardless of grid size; MB*S is
        capped (~lane_cap) to bound the live vreg footprint of buf/stacked/acc.
    M is padded up to a multiple of MB (padded rows are zeros, sliced off), so
    large B*N automatically yields >=2 grid steps for v7x's two TensorCores.
    """
    G = 128 // math.gcd(128, O)
    step = G
    while (step * S) % 128 != 0:
        step += G
    MB = step * max(1, lane_cap // (step * S))
    # TODO(synk): for very large S (step*S >> lane_cap) chunk the lane axis
    # inside the conv loop instead of accepting one oversized block.
    M_pad = _rup(max(M, 1), MB)
    return MB, M_pad, G


# ---------------------------------------------------------------------------
# Fused kernel factory: all dilated convs + ReLUs + the chunked final Linear.
#
# Packed layout: buf is (P, MB*S).  Row m's activation of length L sits at
# segment columns [off, S); columns [0, off) are zero.  `off` starts at OFFTOT
# and shrinks by (K-1)*d after each conv, so each conv's output lands exactly
# where the next conv expects its (implicitly zero-padded) input — no data
# movement between layers, only a cheap left-margin mask.
# ---------------------------------------------------------------------------
def _make_fused_kernel(n_conv, dils, K, S, off0, MB, G, O, use_bf16):
    W = MB * S
    cdt = jnp.bfloat16 if use_bf16 else jnp.float32

    def kernel(x_ref, *rest):
        conv_refs = rest[:2 * n_conv]
        ql_ref = rest[2 * n_conv]
        bl_ref = rest[2 * n_conv + 1]
        out_ref = rest[2 * n_conv + 2]

        # Position of every lane within its S-wide segment (no HBM input needed).
        posn = lax.broadcasted_iota(jnp.int32, (1, W), 1) % S

        buf = x_ref[...].astype(cdt)                       # (P0, W)

        def shifted(a, s):
            # a[:, c] <- a[:, c + s]: lane rotation on the XLU.  The wrapped
            # columns [0, s) are segment 0's zero left margin (s <= off), so no
            # extra masking of the wrap is required.
            if s == 0:
                return a
            return pltpu.roll(a, shift=W - s, axis=1)

        off = off0
        for c in range(n_conv):
            d = dils[c]
            pad = (K - 1) * d
            # cross-segment / wrapped reads must land in zero margins
            assert pad <= off, (c, pad, off)
            w_ref = conv_refs[2 * c]                        # (P_out, K*P_in)
            b_ref = conv_refs[2 * c + 1]                    # (P_out, 1)
            off_n = off - pad

            # One MXU matmul per conv: the K rolled buffers stacked along the
            # (sublane) channel axis against the tap-packed weight.
            stacked = jnp.concatenate([shifted(buf, j * d) for j in range(K)],
                                      axis=0)               # (K*P_in, W)
            acc = jnp.dot(w_ref[...], stacked,
                          preferred_element_type=jnp.float32)
            acc = jnp.maximum(acc + b_ref[...], 0.0)

            if off_n == 0:
                buf = acc.astype(cdt)                       # fills its segment
            else:
                # Zero the (shrinking) left margin so the next conv's implicit
                # padding reads zeros; the right edge always ends exactly at S.
                buf = jnp.where(posn >= off_n, acc, 0.0).astype(cdt)
            off = off_n

        # Final Linear over the time axis: chunks of G segments against a small
        # block-diagonal weight; each stored slab is G*O lanes (multiple of 128).
        ql = ql_ref[...]                                    # (G*S, G*O)
        bl = bl_ref[...]                                    # (1, G*O)
        for g in range(MB // G):
            chunk = buf[:, g * G * S:(g + 1) * G * S]       # (P_last, G*S)
            y = jnp.dot(chunk, ql, preferred_element_type=jnp.float32) + bl
            out_ref[:, g * G * O:(g + 1) * G * O] = y.astype(out_ref.dtype)

    return kernel


# ---------------------------------------------------------------------------
# TCNBlock forward: single fused pallas_call plus tiny layout plumbing.
# ---------------------------------------------------------------------------
def tcn_block_forward(X, params, kernel_size=3, use_bf16_matmul=False):
    B, N, T, F_in = X.shape
    M = B * N
    K = kernel_size
    layer_num = len(params["tcn"])
    O, L_f = params["linear_w"].shape

    dils = []
    for l in range(layer_num):
        dils += [2 ** l, 2 ** l]                  # two convs per level
    OFFTOT = sum((K - 1) * d for d in dils)       # total time-axis growth
    S = T + OFFTOT                                # per-row packed segment width
    assert S == L_f, (S, L_f)                     # == cal_linear_num for K == 3

    chans = [F_in]
    for layer in params["tcn"]:
        c = layer["w1"].shape[0]
        chans += [c, c]
    pchans = [_rup(c, 8) for c in chans]          # sublane-aligned channel counts
    C_last, P_last = chans[-1], pchans[-1]
    n_conv = 2 * layer_num

    MB, M_pad, G = _choose_blocking(M, S, O)
    n_blk = M_pad // MB
    WTOT = MB * S
    wdt = jnp.bfloat16 if use_bf16_matmul else jnp.float32

    # --- wrapper-side layout plumbing (tiny; fuses into one XLA copy) --------
    # Right-align each (b, n) row inside its S-wide segment (zeros fill the
    # OFFTOT-wide left margin); pad rows and channels up to the aligned sizes.
    x = jnp.transpose(X.reshape(M, T, F_in), (2, 0, 1))            # (F_in, M, T)
    x = jnp.pad(x, ((0, pchans[0] - F_in), (0, M_pad - M), (OFFTOT, 0)))
    x_packed = x.reshape(pchans[0], M_pad * S)

    # Conv weights packed as (P_out, K*P_in): column block j holds tap j.
    def pack_conv(w, b, p_in, p_out):
        c_out, c_in, _ = w.shape
        wt = jnp.transpose(w, (0, 2, 1))                           # (c_out, K, c_in)
        wt = jnp.pad(wt, ((0, p_out - c_out), (0, 0), (0, p_in - c_in)))
        bp = jnp.pad(b, (0, p_out - c_out)).reshape(-1, 1)
        return wt.reshape(p_out, K * p_in).astype(wdt), bp.astype(jnp.float32)

    conv_in = []
    ci = 0
    for layer in params["tcn"]:
        w1, b1 = pack_conv(layer["w1"], layer["b1"], pchans[ci], pchans[ci + 1])
        w2, b2 = pack_conv(layer["w2"], layer["b2"], pchans[ci + 1], pchans[ci + 2])
        conv_in += [w1, b1, w2, b2]
        ci += 2

    # Block-diagonal Linear weight for G segments (G*O lanes, multiple of 128).
    QL = jnp.kron(jnp.eye(G, dtype=jnp.float32), params["linear_w"].T).astype(wdt)
    bl = jnp.tile(params["linear_b"][None, :], (1, G)).astype(jnp.float32)

    kernel = _make_fused_kernel(n_conv, dils, K, S, OFFTOT, MB, G, O,
                                use_bf16_matmul)

    in_specs = [pl.BlockSpec((pchans[0], WTOT), lambda i: (0, i))]
    for arr in conv_in:
        in_specs.append(pl.BlockSpec(arr.shape, lambda i: (0, 0)))
    in_specs.append(pl.BlockSpec(QL.shape, lambda i: (0, 0)))
    in_specs.append(pl.BlockSpec(bl.shape, lambda i: (0, 0)))
    out_spec = pl.BlockSpec((P_last, MB * O), lambda i: (0, i))

    conv_flops = sum(2 * (K * pchans[c]) * pchans[c + 1] * M_pad * S
                     for c in range(n_conv))
    lin_flops = 2 * P_last * (G * S) * (G * O) * (M_pad // G)
    resident_bytes = 4 * (sum(int(a.size) for a in conv_in)
                          + int(QL.size) + int(bl.size))       # counted once
    bytes_acc = 4 * (pchans[0] * M_pad * S + P_last * M_pad * O) + resident_bytes

    y2d = pl.pallas_call(
        kernel,
        out_shape=jax.ShapeDtypeStruct((P_last, M_pad * O), jnp.float32),
        grid=(n_blk,),
        in_specs=in_specs,
        out_specs=out_spec,
        compiler_params=pltpu.CompilerParams(
            dimension_semantics=("parallel",),
            vmem_limit_bytes=32 * 1024 * 1024),
        cost_estimate=pl.CostEstimate(
            flops=int(conv_flops + lin_flops),
            transcendentals=0,
            bytes_accessed=int(bytes_acc)),
    )(x_packed, *conv_in, QL, bl)

    # (P_last, M_pad*O) -> (B, N, C_last, O): strip channel/row padding.
    y = y2d[:C_last].reshape(C_last, M_pad, O)[:, :M]
    return jnp.transpose(y, (1, 0, 2)).reshape(B, N, C_last, O)


# ---------------------------------------------------------------------------
# Deterministic parameter init (synthetic weights; weight_norm at init == v)
# ---------------------------------------------------------------------------
def init_params(key, in_channels, out_channels, channel_size, layer_num,
                num_timesteps_input, kernel_size=3):
    assert len(channel_size) == layer_num
    params = {"tcn": []}
    keys = jax.random.split(key, 4 * layer_num + 2)
    c_prev = in_channels
    ki = 0
    for c_out in channel_size:
        layer = {
            "w1": 0.1 * jax.random.normal(keys[ki + 0], (c_out, c_prev, kernel_size), jnp.float32),
            "b1": 0.01 * jax.random.normal(keys[ki + 1], (c_out,), jnp.float32),
            "w2": 0.1 * jax.random.normal(keys[ki + 2], (c_out, c_out, kernel_size), jnp.float32),
            "b2": 0.01 * jax.random.normal(keys[ki + 3], (c_out,), jnp.float32),
        }
        params["tcn"].append(layer)
        c_prev = c_out
        ki += 4
    linear_num = cal_linear_num(layer_num, num_timesteps_input)
    params["linear_w"] = 0.1 * jax.random.normal(keys[ki], (out_channels, linear_num), jnp.float32)
    params["linear_b"] = 0.01 * jax.random.normal(keys[ki + 1], (out_channels,), jnp.float32)
    return params


# ---------------------------------------------------------------------------
# Pure-JAX reference (lax.conv_general_dilated) for correctness check
# ---------------------------------------------------------------------------
def reference_forward(X, params, kernel_size=3):
    B, N, T, F_in = X.shape
    x = jnp.transpose(X, (0, 3, 1, 2))
    x = jnp.transpose(x, (0, 2, 1, 3)).reshape(B * N, F_in, T)

    def conv(x, w, b, d):
        pad = (kernel_size - 1) * d
        y = lax.conv_general_dilated(
            x, w, window_strides=(1,), padding=[(pad, pad)],
            rhs_dilation=(d,), dimension_numbers=("NCH", "OIH", "NCH"))
        return jnp.maximum(y + b[None, :, None], 0.0)

    for i, layer in enumerate(params["tcn"]):
        d = 2 ** i
        x = conv(x, layer["w1"], layer["b1"], d)
        x = conv(x, layer["w2"], layer["b2"], d)

    M, C_last, L = x.shape
    x = x.reshape(B, N, C_last, L).transpose(0, 2, 1, 3)
    y = jnp.einsum("bcnl,ol->bcno", x, params["linear_w"]) + params["linear_b"]
    return jnp.transpose(y, (0, 2, 1, 3))


if __name__ == "__main__":
    # Small, module-consistent shapes.
    batch, num_nodes, num_timesteps_input, in_channels = 2, 6, 16, 4
    layer_num = 2
    channel_size = [8, 8]
    out_channels = 8
    kernel_size = 3

    root = jax.random.PRNGKey(0)
    kp, kx = jax.random.split(root)
    params = init_params(kp, in_channels, out_channels, channel_size,
                         layer_num, num_timesteps_input, kernel_size)
    X = jax.random.normal(kx, (batch, num_nodes, num_timesteps_input, in_channels),
                          jnp.float32)

    fwd = jax.jit(tcn_block_forward)
    out = jax.block_until_ready(fwd(X, params))
    ref = jax.block_until_ready(reference_forward(X, params, kernel_size))

    expected_shape = (batch, num_nodes, channel_size[-1], out_channels)
    assert out.shape == expected_shape, (out.shape, expected_shape)
    max_err = float(jnp.max(jnp.abs(out - ref)))
    assert jnp.allclose(out, ref, atol=1e-4, rtol=1e-4), max_err

    print("KERNEL_OK")
</pallas_src>

<mosaic_0001>
module attributes {stable_mosaic.version = 11 : i64} {
  func.func @kernel(%arg0: i32, %arg1: memref<8x896xf32, #tpu.memory_space<vmem>>, %arg2: memref<8x24xf32, #tpu.memory_space<vmem>>, %arg3: memref<8x1xf32, #tpu.memory_space<vmem>>, %arg4: memref<8x24xf32, #tpu.memory_space<vmem>>, %arg5: memref<8x1xf32, #tpu.memory_space<vmem>>, %arg6: memref<8x24xf32, #tpu.memory_space<vmem>>, %arg7: memref<8x1xf32, #tpu.memory_space<vmem>>, %arg8: memref<8x24xf32, #tpu.memory_space<vmem>>, %arg9: memref<8x1xf32, #tpu.memory_space<vmem>>, %arg10: memref<448x128xf32, #tpu.memory_space<vmem>>, %arg11: memref<1x128xf32, #tpu.memory_space<vmem>>, %arg12: memref<8x256xf32, #tpu.memory_space<vmem>>) attributes {dimension_semantics = [#tpu.dimension_semantics<parallel>], iteration_bounds = array<i64: 1>, scalar_prefetch = 0 : i64, scratch_operands = 0 : i64, tpu.core_type = #tpu.core_type<tc>, window_params = [{transform_indices = @transform_0, window_bounds = array<i64: 8, 896>}, {pipeline_mode = #tpu.pipeline_mode<synchronous>, transform_indices = @transform_1, window_bounds = array<i64: 8, 24>}, {pipeline_mode = #tpu.pipeline_mode<synchronous>, transform_indices = @transform_2, window_bounds = array<i64: 8, 1>}, {pipeline_mode = #tpu.pipeline_mode<synchronous>, transform_indices = @transform_3, window_bounds = array<i64: 8, 24>}, {pipeline_mode = #tpu.pipeline_mode<synchronous>, transform_indices = @transform_4, window_bounds = array<i64: 8, 1>}, {pipeline_mode = #tpu.pipeline_mode<synchronous>, transform_indices = @transform_5, window_bounds = array<i64: 8, 24>}, {pipeline_mode = #tpu.pipeline_mode<synchronous>, transform_indices = @transform_6, window_bounds = array<i64: 8, 1>}, {pipeline_mode = #tpu.pipeline_mode<synchronous>, transform_indices = @transform_7, window_bounds = array<i64: 8, 24>}, {pipeline_mode = #tpu.pipeline_mode<synchronous>, transform_indices = @transform_8, window_bounds = array<i64: 8, 1>}, {pipeline_mode = #tpu.pipeline_mode<synchronous>, transform_indices = @transform_9, window_bounds = array<i64: 448, 128>}, {pipeline_mode = #tpu.pipeline_mode<synchronous>, transform_indices = @transform_10, window_bounds = array<i64: 1, 128>}, {transform_indices = @transform_11, window_bounds = array<i64: 8, 256>}]} {
    %0 = tpu.iota {dimensions = array<i32: 1>} : vector<1x896xi32>
    %c28_i32 = arith.constant 28 : i32
    %c0_i32 = arith.constant 0 : i32
    %1 = arith.cmpi eq, %c28_i32, %c0_i32 : i32
    %c1_i32 = arith.constant 1 : i32
    %2 = arith.select %1, %c1_i32, %c28_i32 : i32
    %3 = vector.broadcast %2 : i32 to vector<1x896xi32>
    %4 = arith.remsi %0, %3 : vector<1x896xi32>
    %c0_i32_0 = arith.constant 0 : i32
    %5 = vector.broadcast %c0_i32_0 : i32 to vector<1x896xi32>
    %6 = arith.cmpi ne, %4, %5 : vector<1x896xi32>
    %c0_i32_1 = arith.constant 0 : i32
    %7 = vector.broadcast %c0_i32_1 : i32 to vector<1x896xi32>
    %8 = arith.cmpi slt, %4, %7 : vector<1x896xi32>
    %c0_i32_2 = arith.constant 0 : i32
    %9 = arith.cmpi slt, %2, %c0_i32_2 : i32
    %10 = vector.broadcast %9 : i1 to vector<1x896xi1>
    %11 = vector.broadcast %10 : vector<1x896xi1> to vector<1x896xi1>
    %12 = arith.xori %8, %11 : vector<1x896xi1>
    %13 = arith.andi %12, %6 : vector<1x896xi1>
    %14 = vector.broadcast %2 : i32 to vector<1x896xi32>
    %15 = arith.addi %4, %14 : vector<1x896xi32>
    %16 = arith.select %13, %15, %4 : vector<1x896xi1>, vector<1x896xi32>
    %c0 = arith.constant 0 : index
    %c0_3 = arith.constant 0 : index
    %17 = vector.load %arg1[%c0, %c0_3] : memref<8x896xf32, #tpu.memory_space<vmem>>, vector<8x896xf32>
    %c895_i32 = arith.constant 895 : i32
    %18 = tpu.dynamic_rotate %17 by %c895_i32 dim 1 : vector<8x896xf32>, i32 -> vector<8x896xf32>
    %c894_i32 = arith.constant 894 : i32
    %19 = tpu.dynamic_rotate %17 by %c894_i32 dim 1 : vector<8x896xf32>, i32 -> vector<8x896xf32>
    %20 = tpu.concatenate %17, %18, %19 in 0 : vector<8x896xf32>, vector<8x896xf32>, vector<8x896xf32> -> vector<24x896xf32>
    %c0_4 = arith.constant 0 : index
    %c0_5 = arith.constant 0 : index
    %21 = vector.load %arg2[%c0_4, %c0_5] : memref<8x24xf32, #tpu.memory_space<vmem>>, vector<8x24xf32>
    %cst = arith.constant dense<0.000000e+00> : vector<8x896xf32>
    %22 = tpu.matmul %21, %20, %cst {dimension_numbers = #tpu.dot_dimension_numbers<[1], [0], [0], [1], [0, 0, 1, 1], [], []>} : vector<8x24xf32>, vector<24x896xf32>, vector<8x896xf32> -> vector<8x896xf32>
    %c0_6 = arith.constant 0 : index
    %c0_7 = arith.constant 0 : index
    %23 = vector.load %arg3[%c0_6, %c0_7] : memref<8x1xf32, #tpu.memory_space<vmem>>, vector<8x1xf32>
    %24 = vector.broadcast %23 : vector<8x1xf32> to vector<8x896xf32>
    %25 = arith.addf %22, %24 : vector<8x896xf32>
    %cst_8 = arith.constant 0.000000e+00 : f32
    %26 = vector.broadcast %cst_8 : f32 to vector<8x896xf32>
    %27 = arith.maximumf %25, %26 : vector<8x896xf32>
    %c10_i32 = arith.constant 10 : i32
    %28 = vector.broadcast %c10_i32 : i32 to vector<1x896xi32>
    %29 = arith.cmpi sge, %16, %28 : vector<1x896xi32>
    %cst_9 = arith.constant 0.000000e+00 : f32
    %30 = vector.shape_cast %29 : vector<1x896xi1> to vector<1x896xi1>
    %31 = vector.broadcast %30 : vector<1x896xi1> to vector<8x896xi1>
    %32 = vector.broadcast %cst_9 : f32 to vector<8x896xf32>
    %33 = arith.select %31, %27, %32 : vector<8x896xi1>, vector<8x896xf32>
    %c895_i32_10 = arith.constant 895 : i32
    %34 = tpu.dynamic_rotate %33 by %c895_i32_10 dim 1 : vector<8x896xf32>, i32 -> vector<8x896xf32>
    %c894_i32_11 = arith.constant 894 : i32
    %35 = tpu.dynamic_rotate %33 by %c894_i32_11 dim 1 : vector<8x896xf32>, i32 -> vector<8x896xf32>
    %36 = tpu.concatenate %33, %34, %35 in 0 : vector<8x896xf32>, vector<8x896xf32>, vector<8x896xf32> -> vector<24x896xf32>
    %c0_12 = arith.constant 0 : index
    %c0_13 = arith.constant 0 : index
    %37 = vector.load %arg4[%c0_12, %c0_13] : memref<8x24xf32, #tpu.memory_space<vmem>>, vector<8x24xf32>
    %cst_14 = arith.constant dense<0.000000e+00> : vector<8x896xf32>
    %38 = tpu.matmul %37, %36, %cst_14 {dimension_numbers = #tpu.dot_dimension_numbers<[1], [0], [0], [1], [0, 0, 1, 1], [], []>} : vector<8x24xf32>, vector<24x896xf32>, vector<8x896xf32> -> vector<8x896xf32>
    %c0_15 = arith.constant 0 : index
    %c0_16 = arith.constant 0 : index
    %39 = vector.load %arg5[%c0_15, %c0_16] : memref<8x1xf32, #tpu.memory_space<vmem>>, vector<8x1xf32>
    %40 = vector.broadcast %39 : vector<8x1xf32> to vector<8x896xf32>
    %41 = arith.addf %38, %40 : vector<8x896xf32>
    %cst_17 = arith.constant 0.000000e+00 : f32
    %42 = vector.broadcast %cst_17 : f32 to vector<8x896xf32>
    %43 = arith.maximumf %41, %42 : vector<8x896xf32>
    %c8_i32 = arith.constant 8 : i32
    %44 = vector.broadcast %c8_i32 : i32 to vector<1x896xi32>
    %45 = arith.cmpi sge, %16, %44 : vector<1x896xi32>
    %cst_18 = arith.constant 0.000000e+00 : f32
    %46 = vector.shape_cast %45 : vector<1x896xi1> to vector<1x896xi1>
    %47 = vector.broadcast %46 : vector<1x896xi1> to vector<8x896xi1>
    %48 = vector.broadcast %cst_18 : f32 to vector<8x896xf32>
    %49 = arith.select %47, %43, %48 : vector<8x896xi1>, vector<8x896xf32>
    %c894_i32_19 = arith.constant 894 : i32
    %50 = tpu.dynamic_rotate %49 by %c894_i32_19 dim 1 : vector<8x896xf32>, i32 -> vector<8x896xf32>
    %c892_i32 = arith.constant 892 : i32
    %51 = tpu.dynamic_rotate %49 by %c892_i32 dim 1 : vector<8x896xf32>, i32 -> vector<8x896xf32>
    %52 = tpu.concatenate %49, %50, %51 in 0 : vector<8x896xf32>, vector<8x896xf32>, vector<8x896xf32> -> vector<24x896xf32>
    %c0_20 = arith.constant 0 : index
    %c0_21 = arith.constant 0 : index
    %53 = vector.load %arg6[%c0_20, %c0_21] : memref<8x24xf32, #tpu.memory_space<vmem>>, vector<8x24xf32>
    %cst_22 = arith.constant dense<0.000000e+00> : vector<8x896xf32>
    %54 = tpu.matmul %53, %52, %cst_22 {dimension_numbers = #tpu.dot_dimension_numbers<[1], [0], [0], [1], [0, 0, 1, 1], [], []>} : vector<8x24xf32>, vector<24x896xf32>, vector<8x896xf32> -> vector<8x896xf32>
    %c0_23 = arith.constant 0 : index
    %c0_24 = arith.constant 0 : index
    %55 = vector.load %arg7[%c0_23, %c0_24] : memref<8x1xf32, #tpu.memory_space<vmem>>, vector<8x1xf32>
    %56 = vector.broadcast %55 : vector<8x1xf32> to vector<8x896xf32>
    %57 = arith.addf %54, %56 : vector<8x896xf32>
    %cst_25 = arith.constant 0.000000e+00 : f32
    %58 = vector.broadcast %cst_25 : f32 to vector<8x896xf32>
    %59 = arith.maximumf %57, %58 : vector<8x896xf32>
    %c4_i32 = arith.constant 4 : i32
    %60 = vector.broadcast %c4_i32 : i32 to vector<1x896xi32>
    %61 = arith.cmpi sge, %16, %60 : vector<1x896xi32>
    %cst_26 = arith.constant 0.000000e+00 : f32
    %62 = vector.shape_cast %61 : vector<1x896xi1> to vector<1x896xi1>
    %63 = vector.broadcast %62 : vector<1x896xi1> to vector<8x896xi1>
    %64 = vector.broadcast %cst_26 : f32 to vector<8x896xf32>
    %65 = arith.select %63, %59, %64 : vector<8x896xi1>, vector<8x896xf32>
    %c894_i32_27 = arith.constant 894 : i32
    %66 = tpu.dynamic_rotate %65 by %c894_i32_27 dim 1 : vector<8x896xf32>, i32 -> vector<8x896xf32>
    %c892_i32_28 = arith.constant 892 : i32
    %67 = tpu.dynamic_rotate %65 by %c892_i32_28 dim 1 : vector<8x896xf32>, i32 -> vector<8x896xf32>
    %68 = tpu.concatenate %65, %66, %67 in 0 : vector<8x896xf32>, vector<8x896xf32>, vector<8x896xf32> -> vector<24x896xf32>
    %c0_29 = arith.constant 0 : index
    %c0_30 = arith.constant 0 : index
    %69 = vector.load %arg8[%c0_29, %c0_30] : memref<8x24xf32, #tpu.memory_space<vmem>>, vector<8x24xf32>
    %cst_31 = arith.constant dense<0.000000e+00> : vector<8x896xf32>
    %70 = tpu.matmul %69, %68, %cst_31 {dimension_numbers = #tpu.dot_dimension_numbers<[1], [0], [0], [1], [0, 0, 1, 1], [], []>} : vector<8x24xf32>, vector<24x896xf32>, vector<8x896xf32> -> vector<8x896xf32>
    %c0_32 = arith.constant 0 : index
    %c0_33 = arith.constant 0 : index
    %71 = vector.load %arg9[%c0_32, %c0_33] : memref<8x1xf32, #tpu.memory_space<vmem>>, vector<8x1xf32>
    %72 = vector.broadcast %71 : vector<8x1xf32> to vector<8x896xf32>
    %73 = arith.addf %70, %72 : vector<8x896xf32>
    %cst_34 = arith.constant 0.000000e+00 : f32
    %74 = vector.broadcast %cst_34 : f32 to vector<8x896xf32>
    %75 = arith.maximumf %73, %74 : vector<8x896xf32>
    %c0_35 = arith.constant 0 : index
    %c0_36 = arith.constant 0 : index
    %76 = vector.load %arg10[%c0_35, %c0_36] : memref<448x128xf32, #tpu.memory_space<vmem>>, vector<448x128xf32>
    %c0_37 = arith.constant 0 : index
    %c0_38 = arith.constant 0 : index
    %77 = vector.load %arg11[%c0_37, %c0_38] : memref<1x128xf32, #tpu.memory_space<vmem>>, vector<1x128xf32>
    %78 = vector.extract_strided_slice %75 {offsets = [0, 0], sizes = [8, 448], strides = [1, 1]} : vector<8x896xf32> to vector<8x448xf32>
    %cst_39 = arith.constant dense<0.000000e+00> : vector<8x128xf32>
    %79 = tpu.matmul %78, %76, %cst_39 {dimension_numbers = #tpu.dot_dimension_numbers<[1], [0], [0], [1], [0, 0, 1, 1], [], []>} : vector<8x448xf32>, vector<448x128xf32>, vector<8x128xf32> -> vector<8x128xf32>
    %80 = vector.broadcast %77 : vector<1x128xf32> to vector<8x128xf32>
    %81 = arith.addf %79, %80 : vector<8x128xf32>
    %c0_40 = arith.constant 0 : index
    %c0_41 = arith.constant 0 : index
    %82 = vector.load %arg12[%c0_40, %c0_41] : memref<8x256xf32, #tpu.memory_space<vmem>>, vector<8x128xf32>
    tpu.vector_store %arg12[%c0_40, %c0_41], %81 {strides = array<i32>} : memref<8x256xf32, #tpu.memory_space<vmem>>, vector<8x128xf32>,
    %83 = vector.extract_strided_slice %75 {offsets = [0, 448], sizes = [8, 448], strides = [1, 1]} : vector<8x896xf32> to vector<8x448xf32>
    %cst_42 = arith.constant dense<0.000000e+00> : vector<8x128xf32>
    %84 = tpu.matmul %83, %76, %cst_42 {dimension_numbers = #tpu.dot_dimension_numbers<[1], [0], [0], [1], [0, 0, 1, 1], [], []>} : vector<8x448xf32>, vector<448x128xf32>, vector<8x128xf32> -> vector<8x128xf32>
    %85 = vector.broadcast %77 : vector<1x128xf32> to vector<8x128xf32>
    %86 = arith.addf %84, %85 : vector<8x128xf32>
    %c0_43 = arith.constant 0 : index
    %c128 = arith.constant 128 : index
    %87 = vector.load %arg12[%c0_43, %c128] : memref<8x256xf32, #tpu.memory_space<vmem>>, vector<8x128xf32>
    tpu.vector_store %arg12[%c0_43, %c128], %86 {strides = array<i32>} : memref<8x256xf32, #tpu.memory_space<vmem>>, vector<8x128xf32>,
    return
  }
  func.func @transform_0(%arg0: i32) -> (i32, i32) {
    %c0_i32 = arith.constant 0 : i32
    %c0_i32_0 = arith.constant 0 : i32
    return %c0_i32, %arg0 : i32, i32
  }
  func.func @transform_1(%arg0: i32) -> (i32, i32) {
    %c0_i32 = arith.constant 0 : i32
    %c0_i32_0 = arith.constant 0 : i32
    %c0_i32_1 = arith.constant 0 : i32
    return %c0_i32, %c0_i32_0 : i32, i32
  }
  func.func @transform_2(%arg0: i32) -> (i32, i32) {
    %c0_i32 = arith.constant 0 : i32
    %c0_i32_0 = arith.constant 0 : i32
    %c0_i32_1 = arith.constant 0 : i32
    return %c0_i32, %c0_i32_0 : i32, i32
  }
  func.func @transform_3(%arg0: i32) -> (i32, i32) {
    %c0_i32 = arith.constant 0 : i32
    %c0_i32_0 = arith.constant 0 : i32
    %c0_i32_1 = arith.constant 0 : i32
    return %c0_i32, %c0_i32_0 : i32, i32
  }
  func.func @transform_4(%arg0: i32) -> (i32, i32) {
    %c0_i32 = arith.constant 0 : i32
    %c0_i32_0 = arith.constant 0 : i32
    %c0_i32_1 = arith.constant 0 : i32
    return %c0_i32, %c0_i32_0 : i32, i32
  }
  func.func @transform_5(%arg0: i32) -> (i32, i32) {
    %c0_i32 = arith.constant 0 : i32
    %c0_i32_0 = arith.constant 0 : i32
    %c0_i32_1 = arith.constant 0 : i32
    return %c0_i32, %c0_i32_0 : i32, i32
  }
  func.func @transform_6(%arg0: i32) -> (i32, i32) {
    %c0_i32 = arith.constant 0 : i32
    %c0_i32_0 = arith.constant 0 : i32
    %c0_i32_1 = arith.constant 0 : i32
    return %c0_i32, %c0_i32_0 : i32, i32
  }
  func.func @transform_7(%arg0: i32) -> (i32, i32) {
    %c0_i32 = arith.constant 0 : i32
    %c0_i32_0 = arith.constant 0 : i32
    %c0_i32_1 = arith.constant 0 : i32
    return %c0_i32, %c0_i32_0 : i32, i32
  }
  func.func @transform_8(%arg0: i32) -> (i32, i32) {
    %c0_i32 = arith.constant 0 : i32
    %c0_i32_0 = arith.constant 0 : i32
    %c0_i32_1 = arith.constant 0 : i32
    return %c0_i32, %c0_i32_0 : i32, i32
  }
  func.func @transform_9(%arg0: i32) -> (i32, i32) {
    %c0_i32 = arith.constant 0 : i32
    %c0_i32_0 = arith.constant 0 : i32
    %c0_i32_1 = arith.constant 0 : i32
    return %c0_i32, %c0_i32_0 : i32, i32
  }
  func.func @transform_10(%arg0: i32) -> (i32, i32) {
    %c0_i32 = arith.constant 0 : i32
    %c0_i32_0 = arith.constant 0 : i32
    %c0_i32_1 = arith.constant 0 : i32
    return %c0_i32, %c0_i32_0 : i32, i32
  }
  func.func @transform_11(%arg0: i32) -> (i32, i32) {
    %c0_i32 = arith.constant 0 : i32
    %c0_i32_0 = arith.constant 0 : i32
    return %c0_i32, %arg0 : i32, i32
  }
}

</mosaic_0001>

<bundles_post_ra>
// kernel: tcn_block_forward.1
= control target key start
LH: loop header
LB: loop body
LE: loop exit
PB: predicated region body
PF: predicated region fallthrough
CT: control target
= control target key end

     0   :  { %s2483_s29 = smov 127   ;;  %v2484_v9 = vmov 0.0   ;;  %s2485_s30 = smov 126   ;;  %v2486_v11 = vmov 0.0|0.0   ;;  %vm2487_vm0 = vmmov 0   ;;  %v2488_v12 = vmov 0   ;;  %s3477_s0 = inlined_call_operand.vmem [shape: f32[8,896], index: 0, kind: input, shape index: {}]   ;;  %s3478_s2 = inlined_call_operand.vmem [shape: f32[8,1], index: 2, kind: input, shape index: {}]   ;;  %s3479_s1 = inlined_call_operand.vmem [shape: f32[8,24], index: 1, kind: input, shape index: {}]   ;;  %s3480_s4 = inlined_call_operand.vmem [shape: f32[8,1], index: 4, kind: input, shape index: {}]   ;;  %s3481_s3 = inlined_call_operand.vmem [shape: f32[8,24], index: 3, kind: input, shape index: {}]   ;;  %s3482_s6 = inlined_call_operand.vmem [shape: f32[8,1], index: 6, kind: input, shape index: {}]   ;;  %s3483_s5 = inlined_call_operand.vmem [shape: f32[8,24], index: 5, kind: input, shape index: {}]   ;;  %s3484_s8 = inlined_call_operand.vmem [shape: f32[8,1], index: 8, kind: input, shape index: {}]   ;;  %s3485_s7 = inlined_call_operand.vmem [shape: f32[8,24], index: 7, kind: input, shape index: {}]   ;;  %s3486_s9 = inlined_call_operand.vmem [shape: f32[448,128], index: 9, kind: input, shape index: {}]   ;;  %s3487_s10 = inlined_call_operand.vmem [shape: f32[1,128], index: 10, kind: input, shape index: {}]   ;;  %s3488_s11 = inlined_call_operand.vmem [shape: f32[8,256], index: 11, kind: output, shape index: {}]  }
   0x1   :  { %v2555_v0 = vld [vmem:[%s3477_s0 + $0x20] sm:$0xff]  ;;  %v2560_v1 = vld [vmem:[%s3477_s0 + $0x28] sm:$0xff]  ;;  %v2570_v4 = vld [vmem:[%s3477_s0 + $0x10] sm:$0xff]  ;;  %305 = vmatprep.mubr.f32.mxu0 %v2484_v9  ;;  %2209 = vmatprep.subr.bf16.mxu1 %v2486_v11  ;;  %v38_v14 = vlaneseq  ;;  %vm237_vm3 = vcmask 195584  }
   0x2   :  { %v180_v2 = vld [vmem:[%s3477_s0 + $0x8] sm:$0xff]  ;;  %v2426_v3 = vpack.i.bf16 %v2560_v1, %v2555_v0  ;;  %v179_v5 = vld [vmem:[%s3477_s0] sm:$0xff]  ;;  %v2578_v6 = vld [vmem:[%s3477_s0 + $0x18] sm:$0xff]  ;;  %2155 = vmatprep.mubr.msk.f32.mxu1 %vm2487_vm0, %v2484_v9  ;;  %2431 = vset.pattern.permute.xlu1 %v2488_v12 }
   0x3   :  { %v2416_v7 = vpack.i.bf16 %v2570_v4, %v180_v2  ;;  %v2421_v8 = vpack.i.bf16 %v2578_v6, %v179_v5  ;;  %v2593_v10 = vld [vmem:[%s3477_s0 + $0x30] sm:$0xff]  ;;  %v231_v13 = vld [vmem:[%s3478_s2] sm:$0xff]  ;;  %2482 = vset.pattern.permute.xlu0 %v2488_v12  ;;  %v2613_v15 = vand.u32 127, %v38_v14 }
   0x4   :  { %2427 = vrot.lane.b32.xlu1 %v2426_v3, %s2483_s29  ;;  %v230_v35 = vld [vmem:[%s3479_s1] sm:$0xff] }
   0x5   :  { %2417 = vrot.lane.b32.xlu0 %v2416_v7, %s2483_s29  ;;  %vm200_vm1 = vcmp.lt.s32.totalorder %v2613_v15, 127  ;;  %vm222_vm2 = vcmp.lt.s32.totalorder %v2613_v15, 126  ;;  %v40_v55 = vadd.s32 128, %v2613_v15  ;;  %v41_v56 = vadd.s32 256, %v2613_v15 }
   0x6   :  { %v42_v57 = vadd.s32 384, %v2613_v15  ;;  %v2671_v60 = vmul.u32.u64.low 2454267026, %v2613_v15  ;;  %v2672_v61 = vmul.u32.u64.high 2454267026, %v2613_v15, %v2671_v60  ;;  %v2684_v3 = vadd.s32 640, %v2613_v15 }
   0x7   :  { %v2667_v58 = vmul.u32.u64.low 2454267026, %v40_v55  ;;  %v2668_v59 = vmul.u32.u64.high 2454267026, %v40_v55, %v2667_v58  ;;  %v2674_v62 = vmul.u32.u64.low 2454267026, %v41_v56  ;;  %v2675_v63 = vmul.u32.u64.high 2454267026, %v41_v56, %v2674_v62 }
   0x8   :  { %210 = vrot.lane.b32.xlu1 %v180_v2, %s2485_s30  ;;  %vm52_vm5 = vc.u32 %v2671_v60, 2454267026 }
   0x9   :  { %2422 = vrot.lane.b32.xlu0 %v2421_v8, %s2483_s29  ;;  %vm66_vm4 = vc.u32 %v2667_v58, 2454267026  ;;  %vm80_vm6 = vc.u32 %v2674_v62, 2454267026  ;;  %v53_v7 = vsel %vm52_vm5, 1, %v2488_v12 }
   0xa   :  { %v81_v8 = vsel %vm80_vm6, 1, %v2488_v12 }
   0xc   :  { %208 = vrot.lane.b32.xlu1 %v179_v5, %s2485_s30 }
   0xd   :  { %212 = vrot.lane.b32.xlu0 %v2570_v4, %s2485_s30 }
  0x10   :  { %214 = vrot.lane.b32.xlu1 %v2578_v6, %s2485_s30 }
  0x11   :  { %198 = vrot.lane.b32.xlu0 %v2593_v10, %s2483_s29 }
  0x14   :  { %218 = vrot.lane.b32.xlu1 %v2560_v1, %s2485_s30 }
  0x15   :  { %216 = vrot.lane.b32.xlu0 %v2555_v0, %s2485_s30 }
  0x18   :  { %234 = vperm.xlu1 %2431, %v231_v13  }
  0x19   :  { %220 = vrot.lane.b32.xlu0 %v2593_v10, %s2485_s30 }
  0x76   :  { %v2428_v16 = vpop.permute.xlu1 %2427 }
  0x77   :  { %v2418_v17 = vpop.permute.xlu0 %2417  ;;  %v2429_v25 = vunpack.i.l.bf16 %v2428_v16  ;;  %v2430_v36 = vunpack.i.h.bf16 %v2428_v16 }
  0x78   :  { %v2420_v18 = vunpack.i.h.bf16 %v2418_v17  ;;  %v2419_v19 = vunpack.i.l.bf16 %v2418_v17  ;;  %v54_v17 = vadd.s32 %v2672_v61, %v53_v7 }
  0x79   :  { %v202_v43 = vsel %vm200_vm1, %v2429_v25, %v2430_v36 }
  0x7a   :  { %v211_v20 = vpop.permute.xlu1 %210  ;;  %v205_v21 = vsel %vm200_vm1, %v2419_v19, %v2420_v18  ;;  %v2186_v47 = vpack.c.bf16 %v202_v43, %v2555_v0 }
  0x7b   :  { %v2423_v22 = vpop.permute.xlu0 %2422  ;;  %v2176_v23 = vpack.c.bf16 %v205_v21, %v180_v2  ;;  %v2681_v2 = vadd.s32 512, %v2613_v15 }
  0x7c   :  { %v2424_v24 = vunpack.i.l.bf16 %v2423_v22  ;;  %v2425_v26 = vunpack.i.h.bf16 %v2423_v22 }
  0x7d   :  { %2177 = vmatprep.subr.bf16.mxu0 %v2176_v23  ;;  %v55_v23 = vshrl.u32 %v54_v17, 4 }
  0x7e   :  { %v206_v27 = vsel %vm200_vm1, %v2424_v24, %v2419_v19  ;;  %v209_v28 = vpop.permute.xlu1 %208  ;;  %v203_v32 = vsel %vm200_vm1, %v2425_v26, %v2429_v25  ;;  %v204_v33 = vsel %vm200_vm1, %v2420_v18, %v2425_v26  ;;  %v82_v18 = vadd.s32 %v2675_v63, %v81_v8 }
  0x7f   :  { %v213_v29 = vpop.permute.xlu0 %212  ;;  %v2178_v30 = vpack.c.bf16 %v206_v27, %v179_v5  ;;  %v228_v37 = vsel %vm222_vm2, %v209_v28, %v211_v20  ;;  %v2180_v38 = vpack.c.bf16 %v203_v32, %v2578_v6  ;;  %v2182_v39 = vpack.c.bf16 %v204_v33, %v2570_v4 }
  0x80   :  { %v227_v31 = vsel %vm222_vm2, %v211_v20, %v213_v29  ;;  %v67_v4 = vsel %vm66_vm4, 1, %v2488_v12  ;;  %v2688_v5 = vmul.u32.u64.low 2454267026, %v2681_v2  ;;  %v2689_v6 = vmul.u32.u64.high 2454267026, %v2681_v2, %v2688_v5 }
  0x81   :  { %2179 = vmatpush1.bf16.msra.mxu0 %v2178_v30  ;;  %v68_v14 = vadd.s32 %v2668_v59, %v67_v4  ;;  %v2702_v19 = vadd.s32 768, %v2613_v15  ;;  %v56_v32 = vmul.u32 28, %v55_v23 }
  0x82   :  { %245 = vmatprep.subr.mxu0 %v227_v31  ;;  %v215_v40 = vpop.permute.xlu1 %214  ;;  %vm108_vm8 = vc.u32 %v2688_v5, 2454267026 }
  0x83   :  { %v199_v34 = vpop.permute.xlu0 %198  ;;  %v226_v45 = vsel %vm222_vm2, %v213_v29, %v215_v40  ;;  %v69_v21 = vshrl.u32 %v68_v14, 4  ;;  %v109_v22 = vsel %vm108_vm8, 1, %v2488_v12 }
  0x84   :  { %v201_v41 = vsel %vm200_vm1, %v2430_v36, %v199_v34  ;;  %v207_v51 = vsel %vm200_vm1, %v199_v34, %v2424_v24  ;;  %v83_v24 = vshrl.u32 %v82_v18, 4  ;;  %v110_v30 = vadd.s32 %v2689_v6, %v109_v22 }
  0x85   :  { %246 = vmatpush1.msra.mxu0 %v228_v37  ;;  %v2184_v46 = vpack.c.bf16 %v201_v41, %v2560_v1  ;;  %v2189_v53 = vpack.c.bf16 %v207_v51, %v2593_v10  ;;  %v2677_v0 = vmul.u32.u64.low 2454267026, %v42_v57  ;;  %v2678_v1 = vmul.u32.u64.high 2454267026, %v42_v57, %v2677_v0 }
  0x86   :  { %2014 = vmatmul.mubr.msk.f32.vlgmr.msra.gmra.mrb[0].mxu0 %vm237_vm3, %v230_v35  ;;  %2181 = vmatprep.subr.bf16.mxu0 %v2180_v38  ;;  %v219_v48 = vpop.permute.xlu1 %218  ;;  %v2694_v10 = vmul.u32.u64.low 2454267026, %v2684_v3  ;;  %v2695_v13 = vmul.u32.u64.high 2454267026, %v2684_v3, %v2694_v10  ;;  %v2708_v26 = vmul.u32.u64.low 2454267026, %v2702_v19  ;;  %v2709_v27 = vmul.u32.u64.high 2454267026, %v2702_v19, %v2708_v26 }
  0x87   :  { %v217_v42 = vpop.permute.xlu0 %216  ;;  %2183 = vmatpush1.bf16.msra.mxu0 %v2182_v39  ;;  %376 = vmatprep.mubr.f32.mxu0 %v2484_v9  ;;  %vm94_vm7 = vc.u32 %v2677_v0, 2454267026  ;;  %v70_v29 = vmul.u32 28, %v69_v21  ;;  %v84_v33 = vmul.u32 28, %v83_v24  ;;  %v111_v36 = vshrl.u32 %v110_v30, 4 }
  0x88   :  { %v225_v44 = vsel %vm222_vm2, %v215_v40, %v217_v42  ;;  %v224_v52 = vsel %vm222_vm2, %v217_v42, %v219_v48  ;;  %v95_v16 = vsel %vm94_vm7, 1, %v2488_v12  ;;  %vm122_vm9 = vc.u32 %v2694_v10, 2454267026 }
  0x89   :  { %316 = vmatprep.subr.mxu0 %v225_v44  ;;  %v96_v20 = vadd.s32 %v2678_v1, %v95_v16  ;;  %v123_v25 = vsel %vm122_vm9, 1, %v2488_v12  ;;  %vm136_vm10 = vc.u32 %v2708_v26, 2454267026  ;;  %v57_v38 = vsub.s32 %v2613_v15, %v56_v32 }
  0x8a   :  { %v124_v31 = vadd.s32 %v2695_v13, %v123_v25  ;;  %v137_v39 = vsel %vm136_vm10, 1, %v2488_v12  ;;  %v85_v40 = vsub.s32 %v41_v56, %v84_v33  ;;  %v112_v42 = vmul.u32 28, %v111_v36 }
  0x8b   :  { %v221_v49 = vpop.permute.xlu0 %220  ;;  %317 = vmatpush1.msra.mxu0 %v226_v45  ;;  %v138_v43 = vadd.s32 %v2709_v27, %v137_v39  ;;  %vm144_vm13 = vcmp.ne.s32.totalorder %v57_v38, 0  ;;  %vm151_vm14 = vcmp.lt.s32.totalorder %v57_v38, 0 }
  0x8c   :  { %2015 = vmatmul.mubr.msk.f32.vlgmr.msra.gmra.mrb[2].mxu0 %vm237_vm3, %v230_v35  ;;  %2185 = vmatprep.subr.bf16.mxu0 %v2184_v46  ;;  %v223_v50 = vsel %vm222_vm2, %v219_v48, %v221_v49  ;;  %v229_v54 = vsel %vm222_vm2, %v221_v49, %v209_v28  ;;  %v97_v28 = vshrl.u32 %v96_v20, 4  ;;  %v125_v37 = vshrl.u32 %v124_v31, 4  ;;  %vm2723_vm8 = vmand %vm151_vm14, %vm144_vm13 }
  0x8d   :  { %2187 = vmatpush1.bf16.msra.mxu0 %v2186_v47  ;;  %447 = vmatprep.mubr.f32.mxu0 %v2484_v9  ;;  %vm146_vm15 = vcmp.ne.s32.totalorder %v85_v40, 0  ;;  %vm153_vm4 = vcmp.lt.s32.totalorder %v85_v40, 0  ;;  %v167_v49 = vadd.s32 28, %v85_v40 }
  0x8e   :  { %387 = vmatprep.subr.mxu0 %v223_v50  ;;  %v98_v34 = vmul.u32 28, %v97_v28  ;;  %v126_v44 = vmul.u32 28, %v125_v37  ;;  %v113_v50 = vsub.s32 %v2681_v2, %v112_v42  ;;  %vm160_vm9 = vmand %vm153_vm4, %vm146_vm15 }
  0x8f   :  { %v2738_v59 = vsel %vm160_vm9, %v167_v49, %v85_v40 }
  0x90   :  { %v99_v41 = vsub.s32 %v42_v57, %v98_v34  ;;  %vm533_vm4 = vcmp.ge.s32.totalorder %v2738_v59, 10 }
  0x91   :  { %388 = vmatpush1.msra.mxu0 %v224_v52  ;;  %v139_v52 = vshrl.u32 %v138_v43, 4 }
  0x92   :  { %2016 = vmatmul.mubr.msk.f32.vlgmr.msra.gmra.mrb[4].mxu0 %vm237_vm3, %v230_v35  ;;  %2188 = vmatprep.subr.bf16.mxu0 %v2486_v11  ;;  %vm147_vm6 = vcmp.ne.s32.totalorder %v99_v41, 0  ;;  %vm154_vm7 = vcmp.lt.s32.totalorder %v99_v41, 0 }
  0x93   :  { %2190 = vmatpush3.bf16.msra.mxu0 %v2189_v53  ;;  %2146 = vmatprep.mubr.msk.f32.mxu0 %vm2487_vm0, %v2484_v9  ;;  %v168_v53 = vadd.s32 28, %v99_v41  ;;  %vm161_vm10 = vmand %vm154_vm7, %vm147_vm6  ;;  %v140_v60 = vmul.u32 28, %v139_v52 }
  0x94   :  { %2144 = vmatprep.subr.mxu0 %v2484_v9 }
  0x95   :  { %v2740_v62 = vsel %vm161_vm10, %v168_v53, %v99_v41  ;;  %v141_v8 = vsub.s32 %v2702_v19, %v140_v60 }
  0x96   :  { %vm534_vm6 = vcmp.ge.s32.totalorder %v2740_v62, 10 }
  0x97   :  { %2145 = vmatpush3.msra.mxu0 %v229_v54  ;;  %v2716_v46 = vpop.permute.xlu1 %234  ;;  %v127_v54 = vsub.s32 %v2684_v3, %v126_v44  ;;  %v169_v3 = vadd.s32 28, %v113_v50  ;;  %vm150_vm9 = vcmp.ne.s32.totalorder %v141_v8, 0  ;;  %vm157_vm10 = vcmp.lt.s32.totalorder %v141_v8, 0 }
  0x98   :  { %2147 = vmatmul.mubr.msk.f32.vlgmr.msra.gmra.mrb[6].mxu0 %vm237_vm3, %v230_v35  ;;  %v71_v35 = vsub.s32 %v40_v55, %v70_v29  ;;  %v165_v55 = vadd.s32 28, %v57_v38  ;;  %v171_v27 = vadd.s32 28, %v141_v8 }
  0x99   :  { %675 = vmatprep.mubr.f32.mxu0 %v2484_v9  ;;  %vm149_vm13 = vcmp.ne.s32.totalorder %v127_v54, 0  ;;  %vm156_vm14 = vcmp.lt.s32.totalorder %v127_v54, 0  ;;  %v170_v5 = vadd.s32 28, %v127_v54 }
  0x9a   :  { %vm145_vm11 = vcmp.ne.s32.totalorder %v71_v35, 0  ;;  %vm152_vm12 = vcmp.lt.s32.totalorder %v71_v35, 0  ;;  %v166_v12 = vadd.s32 28, %v71_v35  ;;  %v2744_v63 = vsel %vm2723_vm8, %v165_v55, %v57_v38  ;;  %vm163_vm7 = vmand %vm156_vm14, %vm149_vm13  ;;  %v602_v38 = vld [vmem:[%s3480_s4] sm:$0xff] }
  0x9b   :  { %vm2718_vm5 = vmand %vm152_vm12, %vm145_vm11  ;;  %vm148_vm11 = vcmp.ne.s32.totalorder %v113_v50, 0  ;;  %vm155_vm12 = vcmp.lt.s32.totalorder %v113_v50, 0  ;;  %vm531_vm8 = vcmp.ge.s32.totalorder %v2744_v63, 10  ;;  %v2777_v19 = vsel %vm163_vm7, %v170_v5, %v127_v54  ;;  %v601_v54 = vld [vmem:[%s3481_s3] sm:$0xff]  ;;  %s2490_s3 = smov 124  }
  0x9c   :  { %v2733_v57 = vsel %vm2718_vm5, %v166_v12, %v71_v35  ;;  %vm162_vm5 = vmand %vm155_vm12, %vm148_vm11  ;;  %vm536_vm12 = vcmp.ge.s32.totalorder %v2777_v19, 10 }
  0x9d   :  { %vm532_vm15 = vcmp.ge.s32.totalorder %v2733_v57, 10  ;;  %v2771_v16 = vsel %vm162_vm5, %v169_v3, %v113_v50  ;;  %vm164_vm13 = vmand %vm157_vm10, %vm150_vm9  ;;  %vm2489_vm5 = vmmov 1  }
  0x9e   :  { %vm535_vm11 = vcmp.ge.s32.totalorder %v2771_v16, 10  ;;  %v2806_v35 = vsel %vm164_vm13, %v171_v27, %v141_v8  ;;  %vm2192_vm7 = vmpackc.low %vm2489_vm5, %vm532_vm15  ;;  %vm904_vm13 = vcmp.ge.s32.totalorder %v2740_v62, 8 }
  0x9f   :  { %vm537_vm14 = vcmp.ge.s32.totalorder %v2806_v35, 10  ;;  %vm2195_vm9 = vmpackc.low %vm2489_vm5, %vm531_vm8 }
  0xa0   :  { %vm2207_vm10 = vmpackc.low %vm2489_vm5, %vm535_vm11 }
 0x159   :  { %v307_v45 = vpop.f32.mrb[0].mxu0 }
 0x15a   :  { %v309_v48 = vpop.f32.mrb[1].mxu0  ;;  %v2736_v58 = vadd.f32 %v307_v45, %v2716_v46 }
 0x15b   :  { %v2729_v56 = vadd.f32 %v309_v48, %v2716_v46 }
 0x15c   :  { %v524_v6 = vmax.f32 %v2736_v58, 0.0 }
 0x15d   :  { %v525_v0 = vmax.f32 %v2729_v56, 0.0 }
 0x15e   :  { %v552_v21 = vsel %vm531_vm8, %v524_v6, 0.0  ;;  %vm2201_vm8 = vmpackc.low %vm2489_vm5, %vm533_vm4 }
 0x15f   :  { %v378_v61 = vpop.f32.mrb[2].mxu0  ;;  %v553_v13 = vsel %vm532_vm15, %v525_v0, 0.0  ;;  %vm2198_vm15 = vmpackc.low %vm2489_vm5, %vm534_vm6 }
 0x160   :  { %v2749_v1 = vadd.f32 %v378_v61, %v2716_v46  ;;  %v380_v2 = vpop.f32.mrb[3].mxu0 }
 0x161   :  { %v2753_v4 = vadd.f32 %v380_v2, %v2716_v46 }
 0x162   :  { %v526_v7 = vmax.f32 %v2749_v1, 0.0 }
 0x163   :  { %v527_v10 = vmax.f32 %v2753_v4, 0.0 }
 0x164   :  { %v554_v14 = vsel %vm533_vm4, %v526_v7, 0.0  ;;  %vm2204_vm4 = vmpackc.low %vm2489_vm5, %vm536_vm12 }
 0x165   :  { %v555_v17 = vsel %vm534_vm6, %v527_v10, 0.0  ;;  %v449_v18 = vpop.f32.mrb[4].mxu0  ;;  %v2432_v20 = vpack.i.bf16 %v554_v14, %v553_v13  ;;  %vm2211_vm6 = vmpackc.low %vm2489_vm5, %vm537_vm14 }
 0x166   :  { %v2784_v22 = vadd.f32 %v449_v18, %v2716_v46  ;;  %v451_v23 = vpop.f32.mrb[5].mxu0  ;;  %v2437_v24 = vpack.i.bf16 %v555_v17, %v552_v21 }
 0x167   :  { %v2788_v25 = vadd.f32 %v451_v23, %v2716_v46  ;;  %2433 = vrot.lane.b32.xlu0 %v2432_v20, %s2483_s29 }
 0x168   :  { %v528_v26 = vmax.f32 %v2784_v22, 0.0  ;;  %2438 = vrot.lane.b32.xlu1 %v2437_v24, %s2483_s29 }
 0x169   :  { %v529_v28 = vmax.f32 %v2788_v25, 0.0 }
 0x16a   :  { %v556_v29 = vsel %vm535_vm11, %v528_v26, 0.0  ;;  %vm903_vm11 = vcmp.ge.s32.totalorder %v2738_v59, 8 }
 0x16b   :  { %v557_v30 = vsel %vm536_vm12, %v529_v28, 0.0  ;;  %v520_v31 = vpop.f32.mrb[6].mxu0  ;;  %584 = vrot.lane.b32.xlu0 %v554_v14, %s2485_s30  ;;  %vm901_vm12 = vcmp.ge.s32.totalorder %v2744_v63, 8 }
 0x16c   :  { %v521_v32 = vadd.f32 %v520_v31, %v2716_v46  ;;  %582 = vrot.lane.b32.xlu1 %v553_v13, %s2485_s30  ;;  %v2148_v33 = vpop.f32.mrb[7].mxu0  ;;  %v2442_v34 = vpack.i.bf16 %v557_v30, %v556_v29 }
 0x16e   :  { %v530_v36 = vmax.f32 %v521_v32, 0.0 }
 0x16f   :  { %2443 = vrot.lane.b32.xlu0 %v2442_v34, %s2483_s29 }
 0x170   :  { %580 = vrot.lane.b32.xlu1 %v552_v21, %s2485_s30  ;;  %v558_v37 = vsel %vm537_vm14, %v530_v36, 0.0  ;;  %vm905_vm14 = vcmp.ge.s32.totalorder %v2771_v16, 8 }
 0x173   :  { %571 = vrot.lane.b32.xlu0 %v558_v37, %s2483_s29 }
 0x174   :  { %586 = vrot.lane.b32.xlu1 %v555_v17, %s2485_s30 }
 0x177   :  { %588 = vrot.lane.b32.xlu0 %v556_v29, %s2485_s30 }
 0x178   :  { %590 = vrot.lane.b32.xlu1 %v557_v30, %s2485_s30 }
 0x17b   :  { %592 = vrot.lane.b32.xlu0 %v558_v37, %s2485_s30 }
 0x17c   :  { %605 = vperm.xlu1 %2431, %v602_v38  }
 0x1d9   :  { %v2434_v39 = vpop.permute.xlu0 %2433 }
 0x1da   :  { %v2436_v40 = vunpack.i.h.bf16 %v2434_v39  ;;  %v2435_v41 = vunpack.i.l.bf16 %v2434_v39  ;;  %v2439_v42 = vpop.permute.xlu1 %2438 }
 0x1db   :  { %v2440_v43 = vunpack.i.l.bf16 %v2439_v42  ;;  %v2441_v49 = vunpack.i.h.bf16 %v2439_v42 }
 0x1dc   :  { %v577_v44 = vsel %vm200_vm1, %v2435_v41, %v2436_v40 }
 0x1dd   :  { %v2191_v45 = vpack.c.bf16 %v577_v44, %v525_v0  ;;  %v578_v46 = vsel %vm200_vm1, %v2440_v43, %v2435_v41  ;;  %v585_v47 = vpop.permute.xlu0 %584  ;;  %v576_v55 = vsel %vm200_vm1, %v2436_v40, %v2441_v49 }
 0x1de   :  { %v2194_v12 = vpack.c.bf16 %v578_v46, %v524_v6  ;;  %v583_v48 = vpop.permute.xlu1 %582  ;;  %v2200_v2 = vpack.c.bf16 %v576_v55, %v526_v7 }
 0x1df   :  { %2193 = vmatprep.subr.msk.bf16.mxu0 %vm2192_vm7, %v2191_v45  ;;  %v598_v50 = vsel %vm222_vm2, %v583_v48, %v585_v47  ;;  %vm906_vm7 = vcmp.ge.s32.totalorder %v2777_v19, 8 }
 0x1e0   :  { %2196 = vmatpush1.bf16.msk.msra.mxu0 %vm2195_vm9, %v2194_v12  ;;  %vm907_vm9 = vcmp.ge.s32.totalorder %v2806_v35, 8 }
 0x1e1   :  { %v2444_v51 = vpop.permute.xlu0 %2443  ;;  %615 = vmatprep.subr.mxu0 %v598_v50 }
 0x1e2   :  { %v2445_v52 = vunpack.i.l.bf16 %v2444_v51  ;;  %v581_v53 = vpop.permute.xlu1 %580  ;;  %v2446_v60 = vunpack.i.h.bf16 %v2444_v51 }
 0x1e3   :  { %v599_v56 = vsel %vm222_vm2, %v581_v53, %v583_v48 }
 0x1e4   :  { %v575_v58 = vsel %vm200_vm1, %v2441_v49, %v2445_v52  ;;  %616 = vmatpush1.msra.mxu0 %v599_v56  ;;  %v574_v1 = vsel %vm200_vm1, %v2445_v52, %v2446_v60  ;;  %v973_v56 = vld [vmem:[%s3482_s6] sm:$0xff] }
 0x1e5   :  { %v2197_v61 = vpack.c.bf16 %v575_v58, %v527_v10  ;;  %v572_v0 = vpop.permute.xlu0 %571  ;;  %2020 = vmatmul.mubr.msk.f32.vlgmr.msra.gmra.mrb[8].mxu0 %vm237_vm3, %v601_v54  ;;  %v2206_v14 = vpack.c.bf16 %v574_v1, %v528_v26 }
 0x1e6   :  { %v579_v3 = vsel %vm200_vm1, %v572_v0, %v2440_v43  ;;  %746 = vmatprep.mubr.f32.mxu0 %v2484_v9  ;;  %v587_v6 = vpop.permute.xlu1 %586  ;;  %v573_v4 = vsel %vm200_vm1, %v2446_v60, %v572_v0  ;;  %vm902_vm1 = vcmp.ge.s32.totalorder %v2733_v57, 8 }
 0x1e7   :  { %v2210_v5 = vpack.c.bf16 %v579_v3, %v530_v36  ;;  %2199 = vmatprep.subr.msk.bf16.mxu0 %vm2198_vm15, %v2197_v61  ;;  %v2203_v10 = vpack.c.bf16 %v573_v4, %v529_v28  ;;  %v597_v13 = vsel %vm222_vm2, %v585_v47, %v587_v6  ;;  %vm2214_vm15 = vmpackc.low %vm2489_vm5, %vm902_vm1 }
 0x1e8   :  { %2202 = vmatpush1.bf16.msk.msra.mxu0 %vm2201_vm8, %v2200_v2  ;;  %vm2217_vm8 = vmpackc.low %vm2489_vm5, %vm901_vm12 }
 0x1e9   :  { %v589_v7 = vpop.permute.xlu0 %588  ;;  %2212 = vmatpush3.bf16.msk.msra.mxu1 %vm2211_vm6, %v2210_v5  ;;  %vm964_vm6 = vcmp.lt.s32.totalorder %v2613_v15, 124  ;;  %v1664_v15 = vld [vmem:[%s3486_s9 + $0xb0] sm:$0xff] }
 0x1ea   :  { %v596_v8 = vsel %vm222_vm2, %v587_v6, %v589_v7  ;;  %2153 = vmatprep.subr.mxu1 %v2484_v9  ;;  %v591_v17 = vpop.permute.xlu1 %590 }
 0x1eb   :  { %686 = vmatprep.subr.mxu0 %v596_v8  ;;  %v595_v22 = vsel %vm222_vm2, %v589_v7, %v591_v17 }
 0x1ec   :  { %687 = vmatpush1.msra.mxu0 %v597_v13 }
 0x1ed   :  { %v593_v18 = vpop.permute.xlu0 %592  ;;  %2023 = vmatmul.mubr.msk.f32.vlgmr.msra.gmra.mrb[10].mxu0 %vm237_vm3, %v601_v54  ;;  %2205 = vmatprep.subr.msk.bf16.mxu0 %vm2204_vm4, %v2203_v10  ;;  %vm2220_vm4 = vmpackc.low %vm2489_vm5, %vm904_vm13 }
 0x1ee   :  { %2208 = vmatpush1.bf16.msk.msra.mxu0 %vm2207_vm10, %v2206_v14  ;;  %v594_v20 = vsel %vm222_vm2, %v591_v17, %v593_v18  ;;  %v600_v21 = vsel %vm222_vm2, %v593_v18, %v581_v53  ;;  %817 = vmatprep.mubr.f32.mxu0 %v2484_v9  ;;  %vm2223_vm10 = vmpackc.low %vm2489_vm5, %vm903_vm11 }
 0x1ef   :  { %757 = vmatprep.subr.mxu0 %v594_v20  ;;  %2154 = vmatpush3.msra.mxu1 %v600_v21 }
 0x1f0   :  { %2156 = vmatmul.mubr.msk.f32.vlgmr.msra.gmra.mrb[0].mxu1 %vm237_vm3, %v601_v54 }
 0x1f1   :  { %1117 = vmatprep.mubr.f32.mxu1 %v2484_v9 }
 0x1f2   :  { %758 = vmatpush1.msra.mxu0 %v595_v22 }
 0x1f3   :  { %2026 = vmatmul.mubr.msk.f32.vlgmr.msra.gmra.mrb[12].mxu0 %vm237_vm3, %v601_v54 }
 0x1f4   :  { %1046 = vmatprep.mubr.f32.mxu0 %v2484_v9 }
 0x1fb   :  { %v606_v24 = vpop.permute.xlu1 %605 }
 0x2b8   :  { %v677_v23 = vpop.f32.mrb[8].mxu0 }
 0x2b9   :  { %v679_v25 = vpop.f32.mrb[9].mxu0  ;;  %v2895_v28 = vadd.f32 %v677_v23, %v606_v24 }
 0x2ba   :  { %v680_v26 = vadd.f32 %v679_v25, %v606_v24 }
 0x2bb   :  { %v894_v33 = vmax.f32 %v2895_v28, 0.0 }
 0x2bc   :  { %v895_v27 = vmax.f32 %v680_v26, 0.0 }
 0x2bd   :  { %v922_v42 = vsel %vm901_vm12, %v894_v33, 0.0  ;;  %vm2233_vm12 = vmpackc.low %vm2489_vm5, %vm907_vm9 }
 0x2be   :  { %v923_v29 = vsel %vm902_vm1, %v895_v27, 0.0  ;;  %vm2226_vm1 = vmpackc.low %vm2489_vm5, %vm906_vm7 }
 0x2bf   :  { %952 = vrot.lane.b32.xlu0 %v923_v29, %s2490_s3 }
 0x2c0   :  { %v748_v30 = vpop.f32.mrb[10].mxu0 }
 0x2c1   :  { %v2900_v31 = vadd.f32 %v748_v30, %v606_v24  ;;  %v750_v32 = vpop.f32.mrb[11].mxu0 }
 0x2c2   :  { %v2903_v34 = vadd.f32 %v750_v32, %v606_v24 }
 0x2c3   :  { %v896_v36 = vmax.f32 %v2900_v31, 0.0  ;;  %v890_v37 = vpop.f32.mrb[0].mxu1 }
 0x2c4   :  { %v897_v38 = vmax.f32 %v2903_v34, 0.0  ;;  %v2157_v39 = vpop.f32.mrb[1].mxu1  ;;  %v2910_v40 = vadd.f32 %v890_v37, %v606_v24 }
 0x2c5   :  { %v924_v41 = vsel %vm903_vm11, %v896_v36, 0.0  ;;  %vm2229_vm11 = vmpackc.low %vm2489_vm5, %vm905_vm14 }
 0x2c6   :  { %v925_v43 = vsel %vm904_vm13, %v897_v38, 0.0  ;;  %v819_v44 = vpop.f32.mrb[12].mxu0  ;;  %954 = vrot.lane.b32.xlu1 %v924_v41, %s2490_s3  ;;  %v2447_v45 = vpack.i.bf16 %v924_v41, %v923_v29  ;;  %v900_v49 = vmax.f32 %v2910_v40, 0.0  ;;  %vm1273_vm13 = vcmp.ge.s32.totalorder %v2733_v57, 4 }
 0x2c7   :  { %v2923_v46 = vadd.f32 %v819_v44, %v606_v24  ;;  %v821_v47 = vpop.f32.mrb[13].mxu0  ;;  %v2452_v12 = vpack.i.bf16 %v925_v43, %v922_v42 }
 0x2c8   :  { %v822_v48 = vadd.f32 %v821_v47, %v606_v24  ;;  %2448 = vrot.lane.b32.xlu0 %v2447_v45, %s2485_s30  ;;  %v928_v54 = vsel %vm907_vm9, %v900_v49, 0.0  ;;  %vm1277_vm9 = vcmp.ge.s32.totalorder %v2777_v19, 4 }
 0x2c9   :  { %v898_v50 = vmax.f32 %v2923_v46, 0.0 }
 0x2ca   :  { %v899_v51 = vmax.f32 %v822_v48, 0.0  ;;  %2453 = vrot.lane.b32.xlu1 %v2452_v12, %s2485_s30 }
 0x2cb   :  { %v926_v52 = vsel %vm905_vm14, %v898_v50, 0.0  ;;  %vm1274_vm14 = vcmp.ge.s32.totalorder %v2738_v59, 4 }
 0x2cc   :  { %v927_v53 = vsel %vm906_vm7, %v899_v51, 0.0  ;;  %vm1272_vm7 = vcmp.ge.s32.totalorder %v2744_v63, 4  ;;  %v1651_v63 = vld [vmem:[%s3486_s9 + $0x48] sm:$0xff] }
 0x2cd   :  { %v2457_v55 = vpack.i.bf16 %v927_v53, %v926_v52 }
 0x2ce   :  { %941 = vrot.lane.b32.xlu1 %v928_v54, %s2485_s30 }
 0x2cf   :  { %2458 = vrot.lane.b32.xlu0 %v2457_v55, %s2485_s30 }
 0x2d2   :  { %956 = vrot.lane.b32.xlu1 %v925_v43, %s2490_s3 }
 0x2d3   :  { %950 = vrot.lane.b32.xlu0 %v922_v42, %s2490_s3 }
 0x2d6   :  { %960 = vrot.lane.b32.xlu1 %v927_v53, %s2490_s3 }
 0x2d7   :  { %958 = vrot.lane.b32.xlu0 %v926_v52, %s2490_s3 }
 0x2da   :  { %976 = vperm.xlu1 %2431, %v973_v56  }
 0x2db   :  { %962 = vrot.lane.b32.xlu0 %v928_v54, %s2490_s3 }
 0x331   :  { %v953_v58 = vpop.permute.xlu0 %952 }
 0x338   :  { %v955_v60 = vpop.permute.xlu1 %954 }
 0x339   :  { %v969_v18 = vsel %vm964_vm6, %v953_v58, %v955_v60 }
 0x33a   :  { %v2449_v61 = vpop.permute.xlu0 %2448 }
 0x33b   :  { %v2451_v0 = vunpack.i.h.bf16 %v2449_v61  ;;  %v2450_v2 = vunpack.i.l.bf16 %v2449_v61 }
 0x33c   :  { %v2454_v3 = vpop.permute.xlu1 %2453 }
 0x33d   :  { %v947_v5 = vsel %vm222_vm2, %v2450_v2, %v2451_v0  ;;  %v2455_v6 = vunpack.i.l.bf16 %v2454_v3  ;;  %v2456_v1 = vunpack.i.h.bf16 %v2454_v3 }
 0x33e   :  { %v2213_v4 = vpack.c.bf16 %v947_v5, %v895_v27  ;;  %v972_v27 = vld [vmem:[%s3483_s5] sm:$0xff] }
 0x33f   :  { %v948_v7 = vsel %vm222_vm2, %v2455_v6, %v2450_v2  ;;  %v946_v20 = vsel %vm222_vm2, %v2451_v0, %v2456_v1 }
 0x340   :  { %v2216_v8 = vpack.c.bf16 %v948_v7, %v894_v33  ;;  %2215 = vmatprep.subr.msk.bf16.mxu0 %vm2214_vm15, %v2213_v4  ;;  %v942_v10 = vpop.permute.xlu1 %941  ;;  %v2222_v28 = vpack.c.bf16 %v946_v20, %v896_v36  ;;  %vm1278_vm15 = vcmp.ge.s32.totalorder %v2806_v35, 4 }
 0x341   :  { %v2459_v13 = vpop.permute.xlu0 %2458  ;;  %v949_v31 = vsel %vm222_vm2, %v942_v10, %v2455_v6 }
 0x342   :  { %v2461_v14 = vunpack.i.h.bf16 %v2459_v13  ;;  %v2460_v17 = vunpack.i.l.bf16 %v2459_v13  ;;  %2218 = vmatpush1.bf16.msk.msra.mxu0 %vm2217_vm8, %v2216_v8  ;;  %v2232_v37 = vpack.c.bf16 %v949_v31, %v900_v49  ;;  %vm1276_vm8 = vcmp.ge.s32.totalorder %v2771_v16, 4 }
 0x343   :  { %986 = vmatprep.subr.mxu0 %v969_v18 }
 0x344   :  { %v943_v21 = vsel %vm222_vm2, %v2461_v14, %v942_v10  ;;  %v945_v22 = vsel %vm222_vm2, %v2456_v1, %v2460_v17  ;;  %v944_v23 = vsel %vm222_vm2, %v2460_v17, %v2461_v14  ;;  %v957_v29 = vpop.permute.xlu1 %956 }
 0x345   :  { %v2219_v24 = vpack.c.bf16 %v945_v22, %v897_v38  ;;  %v2225_v25 = vpack.c.bf16 %v943_v21, %v899_v51  ;;  %v951_v26 = vpop.permute.xlu0 %950  ;;  %v2228_v32 = vpack.c.bf16 %v944_v23, %v898_v50  ;;  %v968_v36 = vsel %vm964_vm6, %v955_v60, %v957_v29  ;;  %v1343_v21 = vld [vmem:[%s3484_s8] sm:$0xff] }
 0x346   :  { %v970_v30 = vsel %vm964_vm6, %v951_v26, %v953_v58 }
 0x347   :  { %987 = vmatpush1.msra.mxu0 %v970_v30  ;;  %2221 = vmatprep.subr.msk.bf16.mxu1 %vm2220_vm4, %v2219_v24  ;;  %vm1275_vm4 = vcmp.ge.s32.totalorder %v2740_v62, 4 }
 0x348   :  { %2031 = vmatmul.mubr.msk.f32.vlgmr.msra.gmra.mrb[14].mxu0 %vm237_vm3, %v972_v27  ;;  %2224 = vmatpush1.bf16.msk.msra.mxu1 %vm2223_vm10, %v2222_v28  ;;  %v961_v38 = vpop.permute.xlu1 %960  ;;  %vm2236_vm10 = vmpackc.low %vm2489_vm5, %vm1273_vm13 }
 0x349   :  { %2227 = vmatprep.subr.msk.bf16.mxu0 %vm2226_vm1, %v2225_v25  ;;  %v959_v33 = vpop.permute.xlu0 %958  ;;  %1188 = vmatprep.mubr.f32.mxu0 %v2484_v9  ;;  %vm2239_vm1 = vmpackc.low %vm2489_vm5, %vm1272_vm7 }
 0x34a   :  { %2230 = vmatpush1.bf16.msk.msra.mxu0 %vm2229_vm11, %v2228_v32  ;;  %v967_v34 = vsel %vm964_vm6, %v957_v29, %v959_v33  ;;  %v966_v42 = vsel %vm964_vm6, %v959_v33, %v961_v38  ;;  %vm3093_vm11 = vmpackc.low %vm2489_vm5, %vm1274_vm14 }
 0x34b   :  { %1057 = vmatprep.subr.mxu1 %v967_v34 }
 0x34c   :  { %1058 = vmatpush1.msra.mxu1 %v968_v36 }
 0x34d   :  { %v963_v39 = vpop.permute.xlu0 %962  ;;  %2034 = vmatmul.mubr.msk.f32.vlgmr.msra.gmra.mrb[2].mxu1 %vm237_vm3, %v972_v27  ;;  %2231 = vmatprep.subr.bf16.mxu1 %v2486_v11 }
 0x34e   :  { %2234 = vmatpush3.bf16.msk.msra.mxu1 %vm2233_vm12, %v2232_v37  ;;  %v965_v41 = vsel %vm964_vm6, %v961_v38, %v963_v39  ;;  %2164 = vmatprep.mubr.msk.f32.mxu1 %vm2487_vm0, %v2484_v9  ;;  %v971_v40 = vsel %vm964_vm6, %v963_v39, %v951_v26  ;;  %vm2242_vm12 = vmpackc.low %vm2489_vm5, %vm1275_vm4 }
 0x34f   :  { %1128 = vmatprep.subr.mxu0 %v965_v41  ;;  %2162 = vmatprep.subr.mxu1 %v2484_v9 }
 0x350   :  { %1129 = vmatpush1.msra.mxu0 %v966_v42  ;;  %v3100_v42 = vld [vmem:[%s3485_s7] sm:$0xff] }
 0x351   :  { %2037 = vmatmul.mubr.msk.f32.vlgmr.msra.gmra.mrb[16].mxu0 %vm237_vm3, %v972_v27 }
 0x352   :  { %2163 = vmatpush3.msra.mxu1 %v971_v40  ;;  %1416 = vmatprep.mubr.f32.mxu0 %v2484_v9 }
 0x353   :  { %2165 = vmatmul.mubr.msk.f32.vlgmr.msra.gmra.mrb[4].mxu1 %vm237_vm3, %v972_v27 }
 0x354   :  { %1487 = vmatprep.mubr.f32.mxu1 %v2484_v9 }
 0x359   :  { %v977_v44 = vpop.permute.xlu1 %976 }
 0x41b   :  { %v1048_v43 = vpop.f32.mrb[14].mxu0 }
 0x41c   :  { %v1050_v45 = vpop.f32.mrb[15].mxu0  ;;  %v1049_v51 = vadd.f32 %v1048_v43, %v977_v44 }
 0x41d   :  { %v1051_v46 = vadd.f32 %v1050_v45, %v977_v44 }
 0x41e   :  { %v1265_v56 = vmax.f32 %v1049_v51, 0.0 }
 0x41f   :  { %v1266_v47 = vmax.f32 %v1051_v46, 0.0 }
 0x420   :  { %v1119_v12 = vpop.f32.mrb[2].mxu1  ;;  %v1293_v4 = vsel %vm1272_vm7, %v1265_v56, 0.0 }
 0x421   :  { %v3021_v48 = vadd.f32 %v1119_v12, %v977_v44  ;;  %v1121_v49 = vpop.f32.mrb[3].mxu1  ;;  %v1294_v50 = vsel %vm1273_vm13, %v1266_v47, 0.0  ;;  %vm2248_vm13 = vmpackc.low %vm2489_vm5, %vm1277_vm9 }
 0x422   :  { %1323 = vrot.lane.b32.xlu1 %v1294_v50, %s2490_s3  ;;  %v3042_v6 = vadd.f32 %v1121_v49, %v977_v44 }
 0x423   :  { %v1267_v52 = vmax.f32 %v3021_v48, 0.0  ;;  %v1658_v48 = vld [vmem:[%s3486_s9 + $0x80] sm:$0xff] }
 0x424   :  { %v1190_v53 = vpop.f32.mrb[16].mxu0  ;;  %v1268_v13 = vmax.f32 %v3042_v6, 0.0  ;;  %v1674_v6 = vld [vmem:[%s3486_s9 + $0x100] sm:$0xff] }
 0x425   :  { %v1295_v54 = vsel %vm1274_vm14, %v1267_v52, 0.0  ;;  %v1192_v55 = vpop.f32.mrb[17].mxu0  ;;  %v3038_v3 = vadd.f32 %v1190_v53, %v977_v44  ;;  %vm2251_vm14 = vmpackc.low %vm2489_vm5, %vm1276_vm8  ;;  %v1643_v53 = vld [vmem:[%s3486_s9 + $0x8] sm:$0xff] }
 0x426   :  { %v2462_v58 = vpack.i.bf16 %v1295_v54, %v1294_v50  ;;  %v3032_v60 = vadd.f32 %v1192_v55, %v977_v44  ;;  %v1261_v61 = vpop.f32.mrb[4].mxu1  ;;  %v1296_v18 = vsel %vm1275_vm4, %v1268_v13, 0.0  ;;  %v1659_v50 = vld [vmem:[%s3486_s9 + $0x88] sm:$0xff] }
 0x427   :  { %v3036_v0 = vadd.f32 %v1261_v61, %v977_v44  ;;  %v2166_v2 = vpop.f32.mrb[5].mxu1  ;;  %v1269_v10 = vmax.f32 %v3038_v3, 0.0 }
 0x428   :  { %v1270_v5 = vmax.f32 %v3032_v60, 0.0  ;;  %2463 = vrot.lane.b32.xlu0 %v2462_v58, %s2485_s30  ;;  %v1660_v58 = vld [vmem:[%s3486_s9 + $0x90] sm:$0xff]  ;;  %v1661_v60 = vld [vmem:[%s3486_s9 + $0x98] sm:$0xff]  ;;  %v3159_v2 = vpack.c.bf16 %v1659_v50, %v1658_v48  ;;  %v1686_v50 = vld [vmem:[%s3486_s9 + $0x160] sm:$0xff] }
 0x429   :  { %v1271_v7 = vmax.f32 %v3036_v0, 0.0  ;;  %v1297_v17 = vsel %vm1276_vm8, %v1269_v10, 0.0  ;;  %v3175_v35 = vpack.c.bf16 %v1661_v60, %v1660_v58  ;;  %v1675_v0 = vld [vmem:[%s3486_s9 + $0x108] sm:$0xff]  ;;  %v1690_v60 = vld [vmem:[%s3486_s9 + $0x180] sm:$0xff] }
 0x42a   :  { %v1298_v1 = vsel %vm1277_vm9, %v1270_v5, 0.0  ;;  %v1655_v58 = vld [vmem:[%s3486_s9 + $0x68] sm:$0xff] }
 0x42b   :  { %v2467_v8 = vpack.i.bf16 %v1298_v1, %v1293_v4  ;;  %v1299_v14 = vsel %vm1278_vm15, %v1271_v7, 0.0 }
 0x42c   :  { %1325 = vrot.lane.b32.xlu0 %v1295_v54, %s2490_s3  ;;  %v2472_v20 = vpack.i.bf16 %v1296_v18, %v1299_v14 }
 0x42d   :  { %2468 = vrot.lane.b32.xlu1 %v2467_v8, %s2485_s30  ;;  %v1663_v8 = vld [vmem:[%s3486_s9 + $0xa8] sm:$0xff] }
 0x430   :  { %1321 = vrot.lane.b32.xlu0 %v1293_v4, %s2490_s3  ;;  %v1644_v4 = vld [vmem:[%s3486_s9 + $0x10] sm:$0xff] }
 0x431   :  { %1308 = vrot.lane.b32.xlu1 %v1297_v17, %s2485_s30 }
 0x434   :  { %2473 = vrot.lane.b32.xlu0 %v2472_v20, %s2485_s30  ;;  %v1646_v20 = vld [vmem:[%s3486_s9 + $0x20] sm:$0xff] }
 0x435   :  { %1331 = vrot.lane.b32.xlu1 %v1298_v1, %s2490_s3  ;;  %v1645_v1 = vld [vmem:[%s3486_s9 + $0x18] sm:$0xff] }
 0x438   :  { %1333 = vrot.lane.b32.xlu0 %v1299_v14, %s2490_s3  ;;  %v3204_v14 = vpack.c.bf16 %v1645_v1, %v1644_v4  ;;  %v1673_v4 = vld [vmem:[%s3486_s9 + $0xf8] sm:$0xff] }
 0x439   :  { %1327 = vrot.lane.b32.xlu1 %v1296_v18, %s2490_s3 }
 0x43c   :  { %1329 = vrot.lane.b32.xlu0 %v1297_v17, %s2490_s3 }
 0x43d   :  { %1346 = vperm.xlu1 %2431, %v1343_v21   ;;  %v1647_v21 = vld [vmem:[%s3486_s9 + $0x28] sm:$0xff] }
 0x494   :  { %v1324_v23 = vpop.permute.xlu1 %1323 }
 0x49a   :  { %v2464_v22 = vpop.permute.xlu0 %2463 }
 0x49b   :  { %v2466_v24 = vunpack.i.h.bf16 %v2464_v22  ;;  %v2465_v25 = vunpack.i.l.bf16 %v2464_v22  ;;  %v1665_v22 = vld [vmem:[%s3486_s9 + $0xb8] sm:$0xff] }
 0x49d   :  { %v1318_v26 = vsel %vm222_vm2, %v2465_v25, %v2466_v24 }
 0x49e   :  { %v2235_v27 = vpack.c.bf16 %v1318_v26, %v1266_v47  ;;  %v1326_v28 = vpop.permute.xlu0 %1325  ;;  %v1679_v26 = vld [vmem:[%s3486_s9 + $0x128] sm:$0xff] }
 0x49f   :  { %v2469_v29 = vpop.permute.xlu1 %2468  ;;  %v1339_v57 = vsel %vm964_vm6, %v1324_v23, %v1326_v28 }
 0x4a0   :  { %v2470_v30 = vunpack.i.l.bf16 %v2469_v29  ;;  %2237 = vmatprep.subr.msk.bf16.mxu0 %vm2236_vm10, %v2235_v27  ;;  %v2471_v36 = vunpack.i.h.bf16 %v2469_v29  ;;  %v3243_v27 = vpack.c.bf16 %v1665_v22, %v1664_v15  ;;  %v1649_v29 = vld [vmem:[%s3486_s9 + $0x38] sm:$0xff]  ;;  %v1695_v15 = vld [vmem:[%s3486_s9 + $0x1a8] sm:$0xff] }
 0x4a2   :  { %v1319_v32 = vsel %vm222_vm2, %v2470_v30, %v2465_v25  ;;  %v3086_v31 = vpop.permute.xlu0 %1321  ;;  %v3236_v25 = vpack.c.bf16 %v1647_v21, %v1646_v20  ;;  %v1694_v21 = vld [vmem:[%s3486_s9 + $0x1a0] sm:$0xff] }
 0x4a3   :  { %v2238_v33 = vpack.c.bf16 %v1319_v32, %v1265_v56  ;;  %v1309_v34 = vpop.permute.xlu1 %1308  ;;  %v1340_v40 = vsel %vm964_vm6, %v3086_v31, %v1324_v23  ;;  %v1667_v32 = vld [vmem:[%s3486_s9 + $0xc8] sm:$0xff]  ;;  %v3411_v22 = vpack.c.bf16 %v1695_v15, %v1694_v21 }
 0x4a4   :  { %v1315_v59 = vsel %vm222_vm2, %v1309_v34, %v2471_v36 }
 0x4a5   :  { %2240 = vmatpush1.bf16.msk.msra.mxu0 %vm2239_vm1, %v2238_v33  ;;  %v2250_v49 = vpack.c.bf16 %v1315_v59, %v1269_v10  ;;  %v3198_v10 = vpack.c.bf16 %v1675_v0, %v1674_v6  ;;  %v1680_v33 = vld [vmem:[%s3486_s9 + $0x130] sm:$0xff]  ;;  %v1683_v59 = vld [vmem:[%s3486_s9 + $0x148] sm:$0xff] }
 0x4a6   :  { %v2474_v37 = vpop.permute.xlu0 %2473  ;;  %1356 = vmatprep.subr.mxu0 %v1339_v57  ;;  %v1681_v57 = vld [vmem:[%s3486_s9 + $0x138] sm:$0xff]  ;;  %v1672_v0 = vld [vmem:[%s3486_s9 + $0xf0] sm:$0xff] }
 0x4a7   :  { %v2476_v38 = vunpack.i.h.bf16 %v2474_v37  ;;  %v2475_v39 = vunpack.i.l.bf16 %v2474_v37  ;;  %v1332_v41 = vpop.permute.xlu1 %1331  ;;  %v1650_v37 = vld [vmem:[%s3486_s9 + $0x40] sm:$0xff]  ;;  %v3381_v1 = vpack.c.bf16 %v1673_v4, %v1672_v0 }
 0x4a9   :  { %v1317_v43 = vsel %vm222_vm2, %v2466_v24, %v2476_v38  ;;  %v1314_v44 = vsel %vm222_vm2, %v2471_v36, %v2475_v39  ;;  %v1316_v45 = vsel %vm222_vm2, %v2476_v38, %v1309_v34  ;;  %1357 = vmatpush1.msra.mxu0 %v1340_v40  ;;  %v1320_v54 = vsel %vm222_vm2, %v2475_v39, %v2470_v30  ;;  %vm2255_vm2 = vmpackc.low %vm2489_vm5, %vm1278_vm15  ;;  %v1678_v24 = vld [vmem:[%s3486_s9 + $0x120] sm:$0xff]  ;;  %v1668_v38 = vld [vmem:[%s3486_s9 + $0xd0] sm:$0xff] }
 0x4aa   :  { %v2244_v62 = vpack.c.bf16 %v1317_v43, %v1267_v52  ;;  %v2241_v46 = vpack.c.bf16 %v1316_v45, %v1268_v13  ;;  %v2247_v47 = vpack.c.bf16 %v1314_v44, %v1270_v5  ;;  %v1334_v12 = vpop.permute.xlu0 %1333  ;;  %2042 = vmatmul.mubr.msk.f32.vlgmr.msra.gmra.mrb[18].mxu0 %vm237_vm3, %v3100_v42  ;;  %v1642_v52 = vld [vmem:[%s3486_s9] sm:$0xff]  ;;  %v2254_v5 = vpack.c.bf16 %v1320_v54, %v1271_v7  ;;  %v1676_v13 = vld [vmem:[%s3486_s9 + $0x110] sm:$0xff]  ;;  %v1669_v39 = vld [vmem:[%s3486_s9 + $0xd8] sm:$0xff] }
 0x4ab   :  { %1558 = vmatprep.mubr.f32.mxu0 %v2484_v9  ;;  %v1328_v19 = vpop.permute.xlu1 %1327  ;;  %v1335_v16 = vsel %vm964_vm6, %v1332_v41, %v1334_v12  ;;  %v3164_v3 = vpack.c.bf16 %v1643_v53, %v1642_v52  ;;  %v1662_v7 = vld [vmem:[%s3486_s9 + $0xa0] sm:$0xff]  ;;  %v1341_v17 = vsel %vm964_vm6, %v1334_v12, %v3086_v31  ;;  %v3258_v31 = vpack.c.bf16 %v1679_v26, %v1678_v24  ;;  %v1652_v44 = vld [vmem:[%s3486_s9 + $0x50] sm:$0xff]  ;;  %v1653_v45 = vld [vmem:[%s3486_s9 + $0x58] sm:$0xff] }
 0x4ac   :  { %2243 = vmatprep.subr.msk.bf16.mxu1 %vm2242_vm12, %v2241_v46  ;;  %2249 = vmatprep.subr.msk.bf16.mxu0 %vm2248_vm13, %v2247_v47  ;;  %v1338_v61 = vsel %vm964_vm6, %v1326_v28, %v1328_v19  ;;  %v3212_v18 = vpack.c.bf16 %v1663_v8, %v1662_v7  ;;  %v1648_v28 = vld [vmem:[%s3486_s9 + $0x30] sm:$0xff]  ;;  %v1666_v30 = vld [vmem:[%s3486_s9 + $0xc0] sm:$0xff]  ;;  %v3292_v40 = vpack.c.bf16 %v1651_v63, %v1650_v37  ;;  %v1671_v46 = vld [vmem:[%s3486_s9 + $0xe8] sm:$0xff] }
 0x4ad   :  { %2246 = vmatpush1.bf16.msk.msra.mxu1 %vm3093_vm11, %v2244_v62  ;;  %2252 = vmatpush1.bf16.msk.msra.mxu0 %vm2251_vm14, %v2250_v49  ;;  %v3264_v34 = vpack.c.bf16 %v1649_v29, %v1648_v28  ;;  %v3271_v36 = vpack.c.bf16 %v1667_v32, %v1666_v30  ;;  %v3299_v43 = vpack.c.bf16 %v1669_v39, %v1668_v38  ;;  %v1670_v62 = vld [vmem:[%s3486_s9 + $0xe0] sm:$0xff]  ;;  %v1684_v49 = vld [vmem:[%s3486_s9 + $0x150] sm:$0xff]  ;;  %v1689_v54 = vld [vmem:[%s3486_s9 + $0x178] sm:$0xff] }
 0x4ae   :  { %v1330_v51 = vpop.permute.xlu0 %1329  ;;  %1498 = vmatprep.subr.mxu0 %v1335_v16  ;;  %v3317_v12 = vpack.c.bf16 %v1653_v45, %v1652_v44  ;;  %v3327_v16 = vpack.c.bf16 %v1671_v46, %v1670_v62  ;;  %v1688_v53 = vld [vmem:[%s3486_s9 + $0x170] sm:$0xff]  ;;  %v1657_v8 = vld [vmem:[%s3486_s9 + $0x78] sm:$0xff] }
 0x4af   :  { %v1336_v55 = vsel %vm964_vm6, %v1330_v51, %v1332_v41  ;;  %v1337_v56 = vsel %vm964_vm6, %v1328_v19, %v1330_v51  ;;  %v3286_v41 = vpack.c.bf16 %v1681_v57, %v1680_v33  ;;  %v1685_v19 = vld [vmem:[%s3486_s9 + $0x158] sm:$0xff]  ;;  %v1687_v51 = vld [vmem:[%s3486_s9 + $0x168] sm:$0xff]  ;;  %v1656_v7 = vld [vmem:[%s3486_s9 + $0x70] sm:$0xff] }
 0x4b0   :  { %1427 = vmatprep.subr.mxu1 %v1337_v56  ;;  %v3330_v48 = vpack.c.bf16 %v1685_v19, %v1684_v49  ;;  %v3342_v52 = vpack.c.bf16 %v1687_v51, %v1686_v50  ;;  %v1654_v56 = vld [vmem:[%s3486_s9 + $0x60] sm:$0xff]  ;;  %v1696_v24 = vld [vmem:[%s3486_s9 + $0x1b0] sm:$0xff]  ;;  %v1697_v26 = vld [vmem:[%s3486_s9 + $0x1b8] sm:$0xff] }
 0x4b1   :  { %1428 = vmatpush1.msra.mxu1 %v1338_v61  ;;  %1499 = vmatpush1.msra.mxu0 %v1336_v55  ;;  %v3352_v55 = vpack.c.bf16 %v1689_v54, %v1688_v53  ;;  %v3366_v61 = vpack.c.bf16 %v1655_v58, %v1654_v56  ;;  %v3421_v28 = vpack.c.bf16 %v1697_v26, %v1696_v24 }
 0x4b2   :  { %2045 = vmatmul.mubr.msk.f32.vlgmr.msra.gmra.mrb[6].mxu1 %vm237_vm3, %v3100_v42  ;;  %2048 = vmatmul.mubr.msk.f32.vlgmr.msra.gmra.mrb[20].mxu0 %vm237_vm3, %v3100_v42 }
 0x4b3   :  { %2253 = vmatprep.subr.bf16.mxu1 %v2486_v11  ;;  %2173 = vmatprep.mubr.msk.f32.mxu1 %vm2487_vm0, %v2484_v9  ;;  %vm1705_vm0 = vcmask 523264  }
 0x4b4   :  { %2256 = vmatpush3.bf16.msk.msra.mxu1 %vm2255_vm2, %v2254_v5  ;;  %2258 = vmatprep.subr.bf16.mxu0 %v3159_v2  ;;  %v1691_v5 = vld [vmem:[%s3486_s9 + $0x188] sm:$0xff] }
 0x4b5   :  { %2171 = vmatprep.subr.mxu1 %v2484_v9  ;;  %2260 = vmatpush3.bf16.msra.mxu0 %v3164_v3  ;;  %v1677_v9 = vld [vmem:[%s3486_s9 + $0x118] sm:$0xff]  ;;  %v3371_v6 = vpack.c.bf16 %v1691_v5, %v1690_v60 }
 0x4b6   :  { %2262 = vmatprep.subr.bf16.mxu0 %v3175_v35  ;;  %v3230_v23 = vpack.c.bf16 %v1677_v9, %v1676_v13  ;;  %v1692_v13 = vld [vmem:[%s3486_s9 + $0x190] sm:$0xff]  ;;  %v1693_v9 = vld [vmem:[%s3486_s9 + $0x198] sm:$0xff] }
 0x4b7   :  { %v3399_v20 = vpack.c.bf16 %v1693_v9, %v1692_v13 }
 0x4b8   :  { %2172 = vmatpush3.msra.mxu1 %v1341_v17  ;;  %v3393_v17 = vpack.c.bf16 %v1657_v8, %v1656_v7 }
 0x4b9   :  { %2174 = vmatmul.mubr.msk.f32.vlgmr.msra.gmra.mrb[8].mxu1 %vm237_vm3, %v3100_v42  ;;  %2289 = vmatprep.subr.bf16.mxu1 %v2486_v11  ;;  %v1682_v42 = vld [vmem:[%s3486_s9 + $0x140] sm:$0xff]  ;;  %s2491_s9 = smov 64  }
 0x4ba   :  { %2291 = vmatpush1.bf16.msra.mxu1 %v3198_v10  ;;  %2264 = vmatpush3.bf16.msra.mxu0 %v3204_v14  ;;  %v3314_v47 = vpack.c.bf16 %v1683_v59, %v1682_v42 }
 0x4bb   :  { %2292 = vmatprep.subr.bf16.mxu1 %v2486_v11  ;;  %2266 = vmatprep.subr.bf16.mxu0 %v3212_v18 }
 0x4be   :  { %2294 = vmatpush1.bf16.msra.mxu1 %v3230_v23  ;;  %2268 = vmatpush3.bf16.msra.mxu0 %v3236_v25 }
 0x4bf   :  { %2295 = vmatprep.subr.bf16.mxu1 %v2486_v11  ;;  %2270 = vmatprep.subr.bf16.mxu0 %v3243_v27 }
 0x4c2   :  { %2297 = vmatpush1.bf16.msra.mxu1 %v3258_v31  ;;  %2272 = vmatpush3.bf16.msra.mxu0 %v3264_v34 }
 0x4c3   :  { %2298 = vmatprep.subr.bf16.mxu1 %v2486_v11  ;;  %2274 = vmatprep.subr.bf16.mxu0 %v3271_v36 }
 0x4c6   :  { %2300 = vmatpush1.bf16.msra.mxu1 %v3286_v41  ;;  %2276 = vmatpush3.bf16.msra.mxu0 %v3292_v40 }
 0x4c7   :  { %2301 = vmatprep.subr.bf16.mxu1 %v2486_v11  ;;  %2278 = vmatprep.subr.bf16.mxu0 %v3299_v43 }
 0x4ca   :  { %2303 = vmatpush1.bf16.msra.mxu1 %v3314_v47  ;;  %2280 = vmatpush3.bf16.msra.mxu0 %v3317_v12 }
 0x4cb   :  { %2304 = vmatprep.subr.bf16.mxu1 %v2486_v11  ;;  %2282 = vmatprep.subr.bf16.mxu0 %v3327_v16 }
 0x4ce   :  { %2306 = vmatpush1.bf16.msra.mxu1 %v3330_v48  ;;  %2284 = vmatpush3.bf16.msra.mxu0 %v3366_v61 }
 0x4cf   :  { %2307 = vmatprep.subr.bf16.mxu1 %v2486_v11  ;;  %2286 = vmatprep.subr.bf16.mxu0 %v3381_v1 }
 0x4d2   :  { %2309 = vmatpush1.bf16.msra.mxu1 %v3342_v52  ;;  %2288 = vmatpush3.bf16.msra.mxu0 %v3393_v17 }
 0x4d3   :  { %2310 = vmatprep.subr.bf16.mxu1 %v2486_v11  ;;  %2326 = vmatprep.subr.bf16.mxu0 %v3159_v2  ;;  %v1347_v2 = vpop.permute.xlu1 %1346 }
 0x4d6   :  { %2312 = vmatpush1.bf16.msra.mxu1 %v3352_v55 }
 0x4d7   :  { %2313 = vmatprep.subr.bf16.mxu1 %v2486_v11 }
 0x4da   :  { %2315 = vmatpush1.bf16.msra.mxu1 %v3371_v6 }
 0x4db   :  { %2316 = vmatprep.subr.bf16.mxu1 %v2486_v11 }
 0x4de   :  { %2318 = vmatpush1.bf16.msra.mxu1 %v3399_v20 }
 0x4df   :  { %2319 = vmatprep.subr.bf16.mxu1 %v2486_v11 }
 0x4e2   :  { %2321 = vmatpush1.bf16.msra.mxu1 %v3411_v22 }
 0x4e3   :  { %2322 = vmatprep.subr.bf16.mxu1 %v2486_v11 }
 0x4e6   :  { %2324 = vmatpush1.bf16.msra.mxu1 %v3421_v28 }
 0x4e7   :  { %2357 = vmatprep.subr.bf16.mxu1 %v2486_v11 }
 0x57d   :  { %v1418_v29 = vpop.f32.mrb[18].mxu0 }
 0x57e   :  { %v1419_v30 = vadd.f32 %v1418_v29, %v1347_v2  ;;  %v1420_v32 = vpop.f32.mrb[19].mxu0 }
 0x57f   :  { %v1421_v33 = vadd.f32 %v1420_v32, %v1347_v2 }
 0x580   :  { %v1635_v37 = vmax.f32 %v1419_v30, 0.0 }
 0x581   :  { %v1636_v57 = vmax.f32 %v1421_v33, 0.0 }
 0x583   :  { %1773 = vmatprep.mubr.f32.mxu0 %v1636_v57 }
 0x584   :  { %1774 = vmatmul.mubr.f32.vlgmr.msra.gmra.mrb[22].mxu0 %v1635_v37 }
 0x585   :  { %v1489_v63 = vpop.f32.mrb[6].mxu1  ;;  %v1560_v38 = vpop.f32.mrb[20].mxu0  ;;  %2328 = vmatpush3.bf16.msra.mxu0 %v3164_v3 }
 0x586   :  { %v1490_v39 = vadd.f32 %v1489_v63, %v1347_v2  ;;  %v1561_v42 = vadd.f32 %v1560_v38, %v1347_v2  ;;  %v1491_v59 = vpop.f32.mrb[7].mxu1  ;;  %v1562_v44 = vpop.f32.mrb[21].mxu0  ;;  %2330 = vmatprep.subr.bf16.mxu0 %v3175_v35 }
 0x587   :  { %v1492_v45 = vadd.f32 %v1491_v59, %v1347_v2  ;;  %v1563_v62 = vadd.f32 %v1562_v44, %v1347_v2 }
 0x588   :  { %v1639_v46 = vmax.f32 %v1561_v42, 0.0  ;;  %v1637_v50 = vmax.f32 %v1490_v39, 0.0 }
 0x589   :  { %v1638_v49 = vmax.f32 %v1492_v45, 0.0  ;;  %v1640_v19 = vmax.f32 %v1563_v62, 0.0  ;;  %2332 = vmatpush3.bf16.msra.mxu0 %v3204_v14 }
 0x58a   :  { %2334 = vmatprep.subr.bf16.mxu0 %v3212_v18 }
 0x58b   :  { %v2477_v51 = vpack.i.bf16 %v1640_v19, %v1639_v46  ;;  %1853 = vrot.lane.b32.xlu1 %v1638_v49, %s2491_s9  ;;  %2052 = vmatprep.mubr.msk.f32.mxu1 %vm1705_vm0, %v1638_v49 }
 0x58c   :  { %v1631_v3 = vpop.f32.mrb[8].mxu1  ;;  %1844 = vmatmul.mubr.f32.vlgmr.msra.gmra.mrb[10].mxu1 %v1637_v50 }
 0x58d   :  { %v1632_v53 = vadd.f32 %v1631_v3, %v1347_v2  ;;  %2478 = vrot.lane.b32.xlu0 %v2477_v51, %s2491_s9  ;;  %v2175_v35 = vpop.f32.mrb[9].mxu1  ;;  %2359 = vmatpush1.bf16.msra.mxu1 %v3198_v10 }
 0x58e   :  { %2360 = vmatprep.subr.bf16.mxu1 %v2486_v11  ;;  %2336 = vmatpush3.bf16.msra.mxu0 %v3236_v25 }
 0x58f   :  { %v1641_v14 = vmax.f32 %v1632_v53, 0.0  ;;  %2338 = vmatprep.subr.bf16.mxu0 %v3243_v27 }
 0x591   :  { %1859 = vrot.lane.b32.xlu0 %v1641_v14, %s2491_s9  ;;  %2362 = vmatpush1.bf16.msra.mxu1 %v3230_v23 }
 0x592   :  { %2363 = vmatprep.subr.bf16.mxu1 %v2486_v11  ;;  %2340 = vmatpush3.bf16.msra.mxu0 %v3264_v34 }
 0x593   :  { %2342 = vmatprep.subr.bf16.mxu0 %v3271_v36 }
 0x595   :  { %2365 = vmatpush1.bf16.msra.mxu1 %v3258_v31 }
 0x596   :  { %2366 = vmatprep.subr.bf16.mxu1 %v2486_v11  ;;  %2344 = vmatpush3.bf16.msra.mxu0 %v3292_v40 }
 0x597   :  { %2346 = vmatprep.subr.bf16.mxu0 %v3299_v43  ;;  %v2051_v43 = vld [vmem:[%s3487_s10] ss:$0 sm:$0xff] }
 0x599   :  { %2368 = vmatpush1.bf16.msra.mxu1 %v3286_v41 }
 0x59a   :  { %2369 = vmatprep.subr.bf16.mxu1 %v2486_v11  ;;  %2348 = vmatpush3.bf16.msra.mxu0 %v3317_v12 }
 0x59b   :  { %2350 = vmatprep.subr.bf16.mxu0 %v3327_v16 }
 0x59d   :  { %2371 = vmatpush1.bf16.msra.mxu1 %v3314_v47 }
 0x59e   :  { %2372 = vmatprep.subr.bf16.mxu1 %v2486_v11  ;;  %2352 = vmatpush3.bf16.msra.mxu0 %v3366_v61 }
 0x59f   :  { %2354 = vmatprep.subr.bf16.mxu0 %v3381_v1 }
 0x5a1   :  { %2374 = vmatpush1.bf16.msra.mxu1 %v3330_v48 }
 0x5a2   :  { %2375 = vmatprep.subr.bf16.mxu1 %v2486_v11  ;;  %2356 = vmatpush3.bf16.msra.mxu0 %v3393_v17 }
 0x5a5   :  { %2377 = vmatpush1.bf16.msra.mxu1 %v3342_v52 }
 0x5a6   :  { %2378 = vmatprep.subr.bf16.mxu1 %v2486_v11 }
 0x5a9   :  { %2380 = vmatpush1.bf16.msra.mxu1 %v3352_v55 }
 0x5aa   :  { %2381 = vmatprep.subr.bf16.mxu1 %v2486_v11 }
 0x5ad   :  { %2383 = vmatpush1.bf16.msra.mxu1 %v3371_v6 }
 0x5ae   :  { %2384 = vmatprep.subr.bf16.mxu1 %v2486_v11 }
 0x5b1   :  { %2386 = vmatpush1.bf16.msra.mxu1 %v3399_v20 }
 0x5b2   :  { %2387 = vmatprep.subr.bf16.mxu1 %v2486_v11 }
 0x5b5   :  { %2389 = vmatpush1.bf16.msra.mxu1 %v3411_v22 }
 0x5b6   :  { %2390 = vmatprep.subr.bf16.mxu1 %v2486_v11 }
 0x5b9   :  { %2392 = vmatpush1.bf16.msra.mxu1 %v3421_v28 }
 0x5fd   :  { %v1854_v25 = vpop.permute.xlu1 %1853 }
 0x5ff   :  { %v2479_v10 = vpop.permute.xlu0 %2478 }
 0x600   :  { %v2481_v18 = vunpack.i.h.bf16 %v2479_v10  ;;  %v2480_v23 = vunpack.i.l.bf16 %v2479_v10 }
 0x602   :  { %v1862_v27 = vsel %vm1705_vm0, %v2480_v23, %v2481_v18  ;;  %v1861_v31 = vsel %vm1705_vm0, %v1854_v25, %v2480_v23 }
 0x603   :  { %v1860_v34 = vpop.permute.xlu0 %1859  ;;  %1933 = vmatprep.mubr.f32.mxu0 %v1862_v27 }
 0x604   :  { %v1863_v36 = vsel %vm1705_vm0, %v2481_v18, %v1860_v34  ;;  %1934 = vmatmul.mubr.f32.vlgmr.msra.gmra.mrb[24].mxu0 %v1861_v31  ;;  %2053 = vmatprep.mubr.msk.f32.mxu1 %vm1705_vm0, %v1860_v34 }
 0x605   :  { %2004 = vmatmul.mubr.f32.vlgmr.msra.gmra.mrb[12].mxu1 %v1863_v36 }
 0x657   :  { %v2102_v41 = vpop.f32.mrb[22].mxu0 }
 0x658   :  { %v2103_v11 = vpop.f32.mrb[23].mxu0 }
 0x659   :  { %v2104_v40 = vadd.f32 %v2103_v11, %v2102_v41 }
 0x65b   :  { %v1776_v47 = vadd.f32 %v2104_v40, %v2051_v43 }
 0x65f   :  { %v1845_v12 = vpop.f32.mrb[10].mxu1 }
 0x660   :  { %v1846_v16 = vadd.f32 %v1845_v12, %v1776_v47  ;;  %v1847_v48 = vpop.f32.mrb[11].mxu1 }
 0x662   :  { %1849 = vst [vmem:[%s3488_s11] sm:$0xff] %v1846_v16 }
 0x6d7   :  { %v2137_v52 = vpop.f32.mrb[24].mxu0 }
 0x6d8   :  { %v2138_v54 = vpop.f32.mrb[25].mxu0  ;;  %v2005_v55 = vpop.f32.mrb[12].mxu1 }
 0x6d9   :  { %v2139_v56 = vadd.f32 %v2138_v54, %v2137_v52  ;;  %v2007_v58 = vpop.f32.mrb[13].mxu1 }
 0x6db   :  { %v1936_v60 = vadd.f32 %v2139_v56, %v2051_v43 }
 0x6dd   :  { %v2006_v61 = vadd.f32 %v2005_v55, %v1936_v60 }
 0x6df   :  { %2009 = vst [vmem:[%s3488_s11 + $0x8] sm:$0xff] %v2006_v61 }

</bundles_post_ra>
